<compile_context>
chip_gen: v5e
topology: v5e:2x2
jax: 0.10.0
libtpu: 0.0.40
codegen_flags: <defaults>
</compile_context>

<pallas_src>
import functools

import jax
import jax.numpy as jnp
from jax import lax
from jax.experimental import pallas as pl
from jax.experimental.pallas import tpu as pltpu

LANE = 128
SUBLANE = 8


def _round_up(n, m):
    return (n + m - 1) // m * m


def embed_mlp_kernel(x_ref, w1f_ref, b1_ref, w2_ref, b2_ref, o_ref, *, size_voc):
    Bt, C = x_ref.shape              # batch tile, context size
    CVp, Hp = w1f_ref.shape          # padded C*V, padded hidden dim
    mm_dtype = w1f_ref.dtype         # matmul operand dtype (bf16 by default, f32 optional)

    x = x_ref[...]                                                  # (Bt, C) int32

    # Combined one-hot over all context slots: onehot[b, c*V + x[b, c]] = 1.
    # Boolean OR-accumulation (disjoint lane ranges -> OR == sum), single cast at the end.
    k_iota = lax.broadcasted_iota(jnp.int32, (Bt, CVp), 1)
    hit = k_iota == x[:, 0:1]                                       # slot 0 (offset 0)
    for c in range(1, C):                                           # static, small
        hit = jnp.logical_or(hit, k_iota == (x[:, c:c + 1] + c * size_voc))
    onehot = hit.astype(mm_dtype)                                   # (Bt, CVp), pads never hit

    # Fused embedding-gather + linear_1: one (Bt, CVp) x (CVp, Hp) MXU matmul + bias (f32 acc).
    h = jnp.dot(onehot, w1f_ref[...], preferred_element_type=jnp.float32) + b1_ref[...]
    h = jnp.maximum(h, 0.0)                                         # ReLU (f32 VPU)

    # linear_2 into the lane-padded output width (padded columns have -1e30 bias).
    logits = jnp.dot(h.astype(mm_dtype), w2_ref[...],
                     preferred_element_type=jnp.float32) + b2_ref[...]

    # log_softmax along dim=1 (padded columns: exp(-1e30 - m) underflows to 0).
    m = jnp.max(logits, axis=1, keepdims=True)
    lse = jnp.log(jnp.sum(jnp.exp(logits - m), axis=1, keepdims=True)) + m
    o_ref[...] = logits - lse


def prepare_embed_params(emb, w1, b1, w2, b2, *, mm_dtype=jnp.bfloat16):
    """Fold the embedding table into linear_1 and pad/cast weights. Run ONCE per weight set."""
    V, E = emb.shape
    CE, H = w1.shape
    C = CE // E
    dim_out = w2.shape[1]

    Hp = _round_up(H, LANE)          # 64  -> 128
    CVp = _round_up(C * V, LANE)     # 390 -> 512 (full 128-row MXU panels)
    Dp = _round_up(dim_out, LANE)    # 2   -> 128 (lane-dense output)

    # W1f[c*V + v, :] = emb[v, :] @ w1[c*E:(c+1)*E, :]
    w1f = jnp.einsum("ve,ceh->cvh", emb.astype(jnp.float32),
                     w1.astype(jnp.float32).reshape(C, E, H)).reshape(C * V, H)
    w1f_p = jnp.zeros((CVp, Hp), jnp.float32).at[:C * V, :H].set(w1f).astype(mm_dtype)
    b1_p = jnp.zeros((1, Hp), jnp.float32).at[0, :H].set(b1.astype(jnp.float32))
    w2_p = (jnp.zeros((Hp, Dp), jnp.float32)
            .at[:H, :dim_out].set(w2.astype(jnp.float32)).astype(mm_dtype))
    b2_p = jnp.full((1, Dp), -1e30, jnp.float32).at[0, :dim_out].set(b2.astype(jnp.float32))
    return w1f_p, b1_p, w2_p, b2_p


@functools.partial(jax.jit,
                   static_argnames=("size_voc", "dim_out", "block_b", "return_padded"))
def embed_model_forward_prepared(x, w1f_p, b1_p, w2_p, b2_p, *, size_voc, dim_out,
                                 block_b=1024, return_padded=False):
    """x: (B, size_contxt) int word indices.  Returns (B, dim_out) float32 log-probs
    (or the padded (b_pad, 128) block if return_padded=True, to avoid the extra HBM pass)."""
    B, C = x.shape
    CVp, Hp = w1f_p.shape
    Dp = w2_p.shape[1]

    # Batch tile: multiple of 8, capped by block_b, and sized so the grid has >= 2 steps
    # whenever possible (keeps both v7x TensorCores busy via the "parallel" grid axis).
    blk = min(block_b, _round_up(max(1, -(-B // 2)), SUBLANE))
    blk = max(SUBLANE, _round_up(blk, SUBLANE))
    b_pad = _round_up(B, blk)
    x_p = jnp.zeros((b_pad, C), jnp.int32).at[:B, :].set(x.astype(jnp.int32))

    kernel = functools.partial(embed_mlp_kernel, size_voc=size_voc)
    out = pl.pallas_call(
        kernel,
        out_shape=jax.ShapeDtypeStruct((b_pad, Dp), jnp.float32),
        grid_spec=pltpu.PrefetchScalarGridSpec(
            num_scalar_prefetch=0,
            grid=(b_pad // blk,),
            in_specs=[
                pl.BlockSpec((blk, C), lambda i: (i, 0)),        # x batch tile
                pl.BlockSpec((CVp, Hp), lambda i: (0, 0)),       # folded W1 (VMEM-resident)
                pl.BlockSpec((1, Hp), lambda i: (0, 0)),         # b1
                pl.BlockSpec((Hp, Dp), lambda i: (0, 0)),        # w2 (lane-padded)
                pl.BlockSpec((1, Dp), lambda i: (0, 0)),         # b2 (lane-padded)
            ],
            out_specs=pl.BlockSpec((blk, Dp), lambda i: (i, 0)),
        ),
        compiler_params=pltpu.CompilerParams(
            dimension_semantics=("parallel",)),
    )(x_p, w1f_p, b1_p, w2_p, b2_p)

    if return_padded:
        return out                       # (b_pad, 128); cols >= dim_out hold ~-1e30
    return out[:B, :dim_out]


def embed_model_forward(x, emb, w1, b1, w2, b2, *, mm_dtype=jnp.bfloat16, block_b=1024):
    """Convenience one-shot wrapper (folds weights every call; prefer the prepared path)."""
    params = prepare_embed_params(emb, w1, b1, w2, b2, mm_dtype=mm_dtype)
    return embed_model_forward_prepared(x, *params, size_voc=emb.shape[0],
                                        dim_out=w2.shape[1], block_b=block_b)


def reference_forward(x, emb, w1, b1, w2, b2):
    """Pure-JAX reference for correctness check."""
    B, C = x.shape
    embds = emb[x].reshape(B, -1)
    h = jnp.maximum(embds @ w1 + b1, 0.0)
    logits = h @ w2 + b2
    return jax.nn.log_softmax(logits, axis=1)


if __name__ == "__main__":
    # Module hyper-parameters (PyTorch defaults), small shapes.
    size_contxt = 15
    size_voc = 26
    dim_emb = 8
    dim_hid = 64
    dim_out = 2
    batch = 37            # exercises batch padding and a 2-step grid

    key = jax.random.PRNGKey(0)
    k_x, k_emb, k_w1, k_b1, k_w2, k_b2 = jax.random.split(key, 6)

    # Deterministic synthetic parameters (shapes match nn.Embedding / nn.Linear,
    # Linear weights stored (in_features, out_features)).
    emb = jax.random.normal(k_emb, (size_voc, dim_emb), dtype=jnp.float32)
    fan_in_1 = size_contxt * dim_emb
    w1 = jax.random.uniform(k_w1, (fan_in_1, dim_hid), jnp.float32,
                            -1.0 / jnp.sqrt(fan_in_1), 1.0 / jnp.sqrt(fan_in_1))
    b1 = jax.random.uniform(k_b1, (dim_hid,), jnp.float32,
                            -1.0 / jnp.sqrt(fan_in_1), 1.0 / jnp.sqrt(fan_in_1))
    w2 = jax.random.uniform(k_w2, (dim_hid, dim_out), jnp.float32,
                            -1.0 / jnp.sqrt(dim_hid), 1.0 / jnp.sqrt(dim_hid))
    b2 = jax.random.uniform(k_b2, (dim_out,), jnp.float32,
                            -1.0 / jnp.sqrt(dim_hid), 1.0 / jnp.sqrt(dim_hid))

    # Input: (batch, size_contxt) word indices.
    x = jax.random.randint(k_x, (batch, size_contxt), 0, size_voc, dtype=jnp.int32)

    ref = reference_forward(x, emb, w1, b1, w2, b2)

    # Default fast path: bf16 MXU operands (one-hot is exact in bf16; error is weight rounding).
    params_bf16 = prepare_embed_params(emb, w1, b1, w2, b2, mm_dtype=jnp.bfloat16)
    out_bf16 = embed_model_forward_prepared(x, *params_bf16, size_voc=size_voc, dim_out=dim_out)
    out_bf16 = jax.block_until_ready(out_bf16)
    assert out_bf16.shape == (batch, dim_out)
    assert jnp.allclose(out_bf16, ref, atol=2e-2, rtol=2e-2), "bf16 path mismatch vs reference"

    # Strict-precision path: f32 MXU operands, tight tolerance.
    params_f32 = prepare_embed_params(emb, w1, b1, w2, b2, mm_dtype=jnp.float32)
    out_f32 = embed_model_forward_prepared(x, *params_f32, size_voc=size_voc, dim_out=dim_out)
    out_f32 = jax.block_until_ready(out_f32)
    assert jnp.allclose(out_f32, ref, atol=1e-5, rtol=1e-5), "f32 path mismatch vs reference"

    print("KERNEL_OK")
</pallas_src>

<mosaic_0001>
module attributes {stable_mosaic.version = 11 : i64} {
  func.func @embed_mlp_kernel(%arg0: i32, %arg1: memref<24x15xi32, #tpu.memory_space<vmem>>, %arg2: memref<512x128xbf16, #tpu.memory_space<vmem>>, %arg3: memref<1x128xf32, #tpu.memory_space<vmem>>, %arg4: memref<128x128xbf16, #tpu.memory_space<vmem>>, %arg5: memref<1x128xf32, #tpu.memory_space<vmem>>, %arg6: memref<24x128xf32, #tpu.memory_space<vmem>>) attributes {dimension_semantics = [#tpu.dimension_semantics<parallel>], iteration_bounds = array<i64: 2>, scalar_prefetch = 0 : i64, scratch_operands = 0 : i64, tpu.core_type = #tpu.core_type<tc>, window_params = [{transform_indices = @transform_0, window_bounds = array<i64: 24, 15>}, {pipeline_mode = #tpu.pipeline_mode<synchronous>, transform_indices = @transform_1, window_bounds = array<i64: 512, 128>}, {pipeline_mode = #tpu.pipeline_mode<synchronous>, transform_indices = @transform_2, window_bounds = array<i64: 1, 128>}, {pipeline_mode = #tpu.pipeline_mode<synchronous>, transform_indices = @transform_3, window_bounds = array<i64: 128, 128>}, {pipeline_mode = #tpu.pipeline_mode<synchronous>, transform_indices = @transform_4, window_bounds = array<i64: 1, 128>}, {transform_indices = @transform_5, window_bounds = array<i64: 24, 128>}]} {
    %c0 = arith.constant 0 : index
    %c0_0 = arith.constant 0 : index
    %0 = vector.load %arg1[%c0, %c0_0] : memref<24x15xi32, #tpu.memory_space<vmem>>, vector<24x15xi32>
    %1 = tpu.iota {dimensions = array<i32: 1>} : vector<24x512xi32>
    %2 = vector.extract_strided_slice %0 {offsets = [0, 0], sizes = [24, 1], strides = [1, 1]} : vector<24x15xi32> to vector<24x1xi32>
    %3 = vector.broadcast %2 : vector<24x1xi32> to vector<24x512xi32>
    %4 = arith.cmpi eq, %1, %3 : vector<24x512xi32>
    %5 = vector.extract_strided_slice %0 {offsets = [0, 1], sizes = [24, 1], strides = [1, 1]} : vector<24x15xi32> to vector<24x1xi32>
    %c26_i32 = arith.constant 26 : i32
    %6 = vector.broadcast %c26_i32 : i32 to vector<24x1xi32>
    %7 = arith.addi %5, %6 : vector<24x1xi32>
    %8 = vector.broadcast %7 : vector<24x1xi32> to vector<24x512xi32>
    %9 = arith.cmpi eq, %1, %8 : vector<24x512xi32>
    %10 = arith.ori %4, %9 : vector<24x512xi1>
    %11 = vector.extract_strided_slice %0 {offsets = [0, 2], sizes = [24, 1], strides = [1, 1]} : vector<24x15xi32> to vector<24x1xi32>
    %c52_i32 = arith.constant 52 : i32
    %12 = vector.broadcast %c52_i32 : i32 to vector<24x1xi32>
    %13 = arith.addi %11, %12 : vector<24x1xi32>
    %14 = vector.broadcast %13 : vector<24x1xi32> to vector<24x512xi32>
    %15 = arith.cmpi eq, %1, %14 : vector<24x512xi32>
    %16 = arith.ori %10, %15 : vector<24x512xi1>
    %17 = vector.extract_strided_slice %0 {offsets = [0, 3], sizes = [24, 1], strides = [1, 1]} : vector<24x15xi32> to vector<24x1xi32>
    %c78_i32 = arith.constant 78 : i32
    %18 = vector.broadcast %c78_i32 : i32 to vector<24x1xi32>
    %19 = arith.addi %17, %18 : vector<24x1xi32>
    %20 = vector.broadcast %19 : vector<24x1xi32> to vector<24x512xi32>
    %21 = arith.cmpi eq, %1, %20 : vector<24x512xi32>
    %22 = arith.ori %16, %21 : vector<24x512xi1>
    %23 = vector.extract_strided_slice %0 {offsets = [0, 4], sizes = [24, 1], strides = [1, 1]} : vector<24x15xi32> to vector<24x1xi32>
    %c104_i32 = arith.constant 104 : i32
    %24 = vector.broadcast %c104_i32 : i32 to vector<24x1xi32>
    %25 = arith.addi %23, %24 : vector<24x1xi32>
    %26 = vector.broadcast %25 : vector<24x1xi32> to vector<24x512xi32>
    %27 = arith.cmpi eq, %1, %26 : vector<24x512xi32>
    %28 = arith.ori %22, %27 : vector<24x512xi1>
    %29 = vector.extract_strided_slice %0 {offsets = [0, 5], sizes = [24, 1], strides = [1, 1]} : vector<24x15xi32> to vector<24x1xi32>
    %c130_i32 = arith.constant 130 : i32
    %30 = vector.broadcast %c130_i32 : i32 to vector<24x1xi32>
    %31 = arith.addi %29, %30 : vector<24x1xi32>
    %32 = vector.broadcast %31 : vector<24x1xi32> to vector<24x512xi32>
    %33 = arith.cmpi eq, %1, %32 : vector<24x512xi32>
    %34 = arith.ori %28, %33 : vector<24x512xi1>
    %35 = vector.extract_strided_slice %0 {offsets = [0, 6], sizes = [24, 1], strides = [1, 1]} : vector<24x15xi32> to vector<24x1xi32>
    %c156_i32 = arith.constant 156 : i32
    %36 = vector.broadcast %c156_i32 : i32 to vector<24x1xi32>
    %37 = arith.addi %35, %36 : vector<24x1xi32>
    %38 = vector.broadcast %37 : vector<24x1xi32> to vector<24x512xi32>
    %39 = arith.cmpi eq, %1, %38 : vector<24x512xi32>
    %40 = arith.ori %34, %39 : vector<24x512xi1>
    %41 = vector.extract_strided_slice %0 {offsets = [0, 7], sizes = [24, 1], strides = [1, 1]} : vector<24x15xi32> to vector<24x1xi32>
    %c182_i32 = arith.constant 182 : i32
    %42 = vector.broadcast %c182_i32 : i32 to vector<24x1xi32>
    %43 = arith.addi %41, %42 : vector<24x1xi32>
    %44 = vector.broadcast %43 : vector<24x1xi32> to vector<24x512xi32>
    %45 = arith.cmpi eq, %1, %44 : vector<24x512xi32>
    %46 = arith.ori %40, %45 : vector<24x512xi1>
    %47 = vector.extract_strided_slice %0 {offsets = [0, 8], sizes = [24, 1], strides = [1, 1]} : vector<24x15xi32> to vector<24x1xi32>
    %c208_i32 = arith.constant 208 : i32
    %48 = vector.broadcast %c208_i32 : i32 to vector<24x1xi32>
    %49 = arith.addi %47, %48 : vector<24x1xi32>
    %50 = vector.broadcast %49 : vector<24x1xi32> to vector<24x512xi32>
    %51 = arith.cmpi eq, %1, %50 : vector<24x512xi32>
    %52 = arith.ori %46, %51 : vector<24x512xi1>
    %53 = vector.extract_strided_slice %0 {offsets = [0, 9], sizes = [24, 1], strides = [1, 1]} : vector<24x15xi32> to vector<24x1xi32>
    %c234_i32 = arith.constant 234 : i32
    %54 = vector.broadcast %c234_i32 : i32 to vector<24x1xi32>
    %55 = arith.addi %53, %54 : vector<24x1xi32>
    %56 = vector.broadcast %55 : vector<24x1xi32> to vector<24x512xi32>
    %57 = arith.cmpi eq, %1, %56 : vector<24x512xi32>
    %58 = arith.ori %52, %57 : vector<24x512xi1>
    %59 = vector.extract_strided_slice %0 {offsets = [0, 10], sizes = [24, 1], strides = [1, 1]} : vector<24x15xi32> to vector<24x1xi32>
    %c260_i32 = arith.constant 260 : i32
    %60 = vector.broadcast %c260_i32 : i32 to vector<24x1xi32>
    %61 = arith.addi %59, %60 : vector<24x1xi32>
    %62 = vector.broadcast %61 : vector<24x1xi32> to vector<24x512xi32>
    %63 = arith.cmpi eq, %1, %62 : vector<24x512xi32>
    %64 = arith.ori %58, %63 : vector<24x512xi1>
    %65 = vector.extract_strided_slice %0 {offsets = [0, 11], sizes = [24, 1], strides = [1, 1]} : vector<24x15xi32> to vector<24x1xi32>
    %c286_i32 = arith.constant 286 : i32
    %66 = vector.broadcast %c286_i32 : i32 to vector<24x1xi32>
    %67 = arith.addi %65, %66 : vector<24x1xi32>
    %68 = vector.broadcast %67 : vector<24x1xi32> to vector<24x512xi32>
    %69 = arith.cmpi eq, %1, %68 : vector<24x512xi32>
    %70 = arith.ori %64, %69 : vector<24x512xi1>
    %71 = vector.extract_strided_slice %0 {offsets = [0, 12], sizes = [24, 1], strides = [1, 1]} : vector<24x15xi32> to vector<24x1xi32>
    %c312_i32 = arith.constant 312 : i32
    %72 = vector.broadcast %c312_i32 : i32 to vector<24x1xi32>
    %73 = arith.addi %71, %72 : vector<24x1xi32>
    %74 = vector.broadcast %73 : vector<24x1xi32> to vector<24x512xi32>
    %75 = arith.cmpi eq, %1, %74 : vector<24x512xi32>
    %76 = arith.ori %70, %75 : vector<24x512xi1>
    %77 = vector.extract_strided_slice %0 {offsets = [0, 13], sizes = [24, 1], strides = [1, 1]} : vector<24x15xi32> to vector<24x1xi32>
    %c338_i32 = arith.constant 338 : i32
    %78 = vector.broadcast %c338_i32 : i32 to vector<24x1xi32>
    %79 = arith.addi %77, %78 : vector<24x1xi32>
    %80 = vector.broadcast %79 : vector<24x1xi32> to vector<24x512xi32>
    %81 = arith.cmpi eq, %1, %80 : vector<24x512xi32>
    %82 = arith.ori %76, %81 : vector<24x512xi1>
    %83 = vector.extract_strided_slice %0 {offsets = [0, 14], sizes = [24, 1], strides = [1, 1]} : vector<24x15xi32> to vector<24x1xi32>
    %c364_i32 = arith.constant 364 : i32
    %84 = vector.broadcast %c364_i32 : i32 to vector<24x1xi32>
    %85 = arith.addi %83, %84 : vector<24x1xi32>
    %86 = vector.broadcast %85 : vector<24x1xi32> to vector<24x512xi32>
    %87 = arith.cmpi eq, %1, %86 : vector<24x512xi32>
    %88 = arith.ori %82, %87 : vector<24x512xi1>
    %89 = arith.extui %88 : vector<24x512xi1> to vector<24x512xi32>
    %90 = arith.sitofp %89 : vector<24x512xi32> to vector<24x512xf32>
    %91 = arith.truncf %90 : vector<24x512xf32> to vector<24x512xbf16>
    %c0_1 = arith.constant 0 : index
    %c0_2 = arith.constant 0 : index
    %92 = vector.load %arg2[%c0_1, %c0_2] : memref<512x128xbf16, #tpu.memory_space<vmem>>, vector<512x128xbf16>
    %cst = arith.constant dense<0.000000e+00> : vector<24x128xf32>
    %93 = tpu.matmul %91, %92, %cst {dimension_numbers = #tpu.dot_dimension_numbers<[1], [0], [0], [1], [0, 0, 1, 1], [], []>} : vector<24x512xbf16>, vector<512x128xbf16>, vector<24x128xf32> -> vector<24x128xf32>
    %c0_3 = arith.constant 0 : index
    %c0_4 = arith.constant 0 : index
    %94 = vector.load %arg3[%c0_3, %c0_4] : memref<1x128xf32, #tpu.memory_space<vmem>>, vector<1x128xf32>
    %95 = vector.broadcast %94 : vector<1x128xf32> to vector<24x128xf32>
    %96 = arith.addf %93, %95 : vector<24x128xf32>
    %cst_5 = arith.constant 0.000000e+00 : f32
    %97 = vector.broadcast %cst_5 : f32 to vector<24x128xf32>
    %98 = arith.maximumf %96, %97 : vector<24x128xf32>
    %99 = arith.truncf %98 : vector<24x128xf32> to vector<24x128xbf16>
    %c0_6 = arith.constant 0 : index
    %c0_7 = arith.constant 0 : index
    %100 = vector.load %arg4[%c0_6, %c0_7] : memref<128x128xbf16, #tpu.memory_space<vmem>>, vector<128x128xbf16>
    %cst_8 = arith.constant dense<0.000000e+00> : vector<24x128xf32>
    %101 = tpu.matmul %99, %100, %cst_8 {dimension_numbers = #tpu.dot_dimension_numbers<[1], [0], [0], [1], [0, 0, 1, 1], [], []>} : vector<24x128xbf16>, vector<128x128xbf16>, vector<24x128xf32> -> vector<24x128xf32>
    %c0_9 = arith.constant 0 : index
    %c0_10 = arith.constant 0 : index
    %102 = vector.load %arg5[%c0_9, %c0_10] : memref<1x128xf32, #tpu.memory_space<vmem>>, vector<1x128xf32>
    %103 = vector.broadcast %102 : vector<1x128xf32> to vector<24x128xf32>
    %104 = arith.addf %101, %103 : vector<24x128xf32>
    %cst_11 = arith.constant dense<0xFF800000> : vector<24xf32>
    %105 = vector.multi_reduction <maximumf>, %104, %cst_11 [1] : vector<24x128xf32> to vector<24xf32>
    %106 = vector.shape_cast %105 : vector<24xf32> to vector<24x1xf32>
    %107 = vector.broadcast %106 : vector<24x1xf32> to vector<24x128xf32>
    %108 = arith.subf %104, %107 : vector<24x128xf32>
    %109 = math.exp %108 : vector<24x128xf32>
    %cst_12 = arith.constant dense<0.000000e+00> : vector<24xf32>
    %110 = vector.multi_reduction <add>, %109, %cst_12 [1] : vector<24x128xf32> to vector<24xf32>
    %111 = vector.shape_cast %110 : vector<24xf32> to vector<24x1xf32>
    %112 = math.log %111 : vector<24x1xf32>
    %113 = arith.addf %112, %106 : vector<24x1xf32>
    %114 = vector.broadcast %113 : vector<24x1xf32> to vector<24x128xf32>
    %115 = arith.subf %104, %114 : vector<24x128xf32>
    %c0_13 = arith.constant 0 : index
    %c0_14 = arith.constant 0 : index
    %116 = vector.load %arg6[%c0_13, %c0_14] : memref<24x128xf32, #tpu.memory_space<vmem>>, vector<24x128xf32>
    tpu.vector_store %arg6[%c0_13, %c0_14], %115 {strides = array<i32>} : memref<24x128xf32, #tpu.memory_space<vmem>>, vector<24x128xf32>,
    return
  }
  func.func @transform_0(%arg0: i32) -> (i32, i32) {
    %c0_i32 = arith.constant 0 : i32
    %c0_i32_0 = arith.constant 0 : i32
    return %arg0, %c0_i32 : i32, i32
  }
  func.func @transform_1(%arg0: i32) -> (i32, i32) {
    %c0_i32 = arith.constant 0 : i32
    %c0_i32_0 = arith.constant 0 : i32
    %c0_i32_1 = arith.constant 0 : i32
    return %c0_i32, %c0_i32_0 : i32, i32
  }
  func.func @transform_2(%arg0: i32) -> (i32, i32) {
    %c0_i32 = arith.constant 0 : i32
    %c0_i32_0 = arith.constant 0 : i32
    %c0_i32_1 = arith.constant 0 : i32
    return %c0_i32, %c0_i32_0 : i32, i32
  }
  func.func @transform_3(%arg0: i32) -> (i32, i32) {
    %c0_i32 = arith.constant 0 : i32
    %c0_i32_0 = arith.constant 0 : i32
    %c0_i32_1 = arith.constant 0 : i32
    return %c0_i32, %c0_i32_0 : i32, i32
  }
  func.func @transform_4(%arg0: i32) -> (i32, i32) {
    %c0_i32 = arith.constant 0 : i32
    %c0_i32_0 = arith.constant 0 : i32
    %c0_i32_1 = arith.constant 0 : i32
    return %c0_i32, %c0_i32_0 : i32, i32
  }
  func.func @transform_5(%arg0: i32) -> (i32, i32) {
    %c0_i32 = arith.constant 0 : i32
    %c0_i32_0 = arith.constant 0 : i32
    return %arg0, %c0_i32 : i32, i32
  }
}

</mosaic_0001>

<bundles_post_ra>
// kernel: embed_model_forward_prepared.1
= control target key start
LH: loop header
LB: loop body
LE: loop exit
PB: predicated region body
PF: predicated region fallthrough
CT: control target
= control target key end

     0   :  { %10 = vsyncpa [#allocation3], 0  ;;  %s1753_s18 = smov 0   ;;  %s2708_s0 = inlined_call_operand.vmem [shape: s32[48,15], index: 0, kind: input, shape index: {}]   ;;  %s2709_s1 = inlined_call_operand.hbm [shape: bf16[512,128], index: 1, kind: input, shape index: {}]   ;;  %s2710_s2 = inlined_call_operand.vmem [shape: f32[1,128], index: 2, kind: input, shape index: {}]   ;;  %s2711_s3 = inlined_call_operand.vmem [shape: bf16[128,128], index: 3, kind: input, shape index: {}]   ;;  %s2712_s4 = inlined_call_operand.vmem [shape: f32[1,128], index: 4, kind: input, shape index: {}]   ;;  %s2713_s5 = inlined_call_operand.vmem [shape: f32[48,128], index: 5, kind: output, shape index: {}]  }
   0x1 LB: > { %s168_s21 = sshll.u32 %s2709_s1, 4  ;;  %s1337_s22 = sadd.s32 4294967295, %s1702_s18   ;;  %s1702_s18 = sphi %s1753_s18, %s16_s18   ;;  %s169_s21 = int_to_ptr.hbm [resolvable:$true] %s168_s21 }
   0x2   : > { %p1339_p0 = scmp.ge.s32.totalorder %s1702_s18, 1  ;;  %p157_p1 = scmp.lt.s32.totalorder %s1702_s18, 3 }
   0x3   : > { %p1576_p2 = scmp.eq.s32.totalorder %s1337_s22, 0  ;;  %s1704_s23 = smov [#allocation2]  }
   0x4   : > { %p158_p3 = pnand %p1339_p0, %p157_p1  ;;  %s170_s24 = sshll.u32 %s1704_s23, 4  ;;  %s171_s24 = int_to_ptr.vmem [resolvable:$true] %s170_s24 }
   0x5   : > { %s1705_s25 = smov 64   ;;  %s1706_s26 = smov 4  }
   0x6   : > { %p1572_p4 = pneg %p158_p3  ;;  %204 = sbr.rel (%p158_p3) target bundleno = 838 (0x346), region = 40 }
   0x8   : > { %p1573_p5 = pnand %p1576_p2, %p1572_p4 }
   0xa   : > { %1575 = dma.hbm_to_vmem [thread:$0]  (!%p1573_p5), %s169_s21, 4096, %s171_s24, [#allocation3], %s1705_s25, %s1705_s25, %s1706_s26  }
   0xb   : > { %1697 = dma.done.wait (%p1576_p2), [#allocation3], 4096  }
   0xc   : > { %1699 = vsyncadd (%p1576_p2), [#allocation3], 4294963200  ;;  %s233_s27 = smul.u32 3, %s1337_s22  ;;  %v1707_v0 = vmov 0   ;;  %v1708_v1 = vmov 1   ;;  %v1709_v2 = vmov 2   ;;  %v248_v48 = vlaneseq }
   0xd   : > { %1605 = vset.pattern.permute.xlu0 %v1707_v0  ;;  %1606 = vset.pattern.permute.xlu1 %v1708_v1  ;;  %v1710_v12 = vmov 3   ;;  %v1711_v13 = vmov 4   ;;  %v1712_v17 = vmov 5   ;;  %v1713_v21 = vmov 8  }
   0xe   : > { %p234_p6 = scmp.lt.s32.totalorder %s233_s27, 5  ;;  %1607 = vset.pattern.permute.xlu2 %v1709_v2  ;;  %v1714_v22 = vmov 6   ;;  %v1715_v26 = vmov 10   ;;  %v1716_v27 = vmov 7   ;;  %v1717_v31 = vmov 13  }
   0xf   : > { %v1718_v32 = vmov 9   ;;  %v1719_v39 = vmov 11   ;;  %v1720_v42 = vmov 12   ;;  %v1721_v46 = vmov 14  }
  0x10   : > { %s2866_s27 = smov (!%p234_p6, %s233_s27), 5  ;;  %v1842_v51 = vand.u32 127, %v248_v48  ;;  %v1533_v48 = vld [vmem:[#allocation2 + $0x68] sm:$0xff] }
  0x11   : > { %s1344_s28 = sshll.u32 %s2866_s27, 3 }
  0x12   : > { %s1775_s6 = scalar_lea.vmem %s2708_s0, %s1344_s28  ;;  %v1847_v52 = vadd.s32 128, %v1842_v51  ;;  %v1850_v53 = vadd.s32 256, %v1842_v51  ;;  %v1855_v56 = vadd.s32 384, %v1842_v51  ;;  %s243_s7 = scalar_lea.vmem %s2713_s5, %s1344_s28 }
  0x13   : > { %v1778_v3 = vld [vmem:[%s1775_s6] sm:$0xff]  ;;  %v1784_v6 = vld [vmem:[%s1775_s6 + $0x8] sm:$0xff]  ;;  %v1823_v35 = vld [vmem:[%s1775_s6 + $0x10] sm:$0xff] }
  0x14   : > { %254 = vperm.xlu0 %1605, %v1778_v3   ;;  %v274_v4 = vadd.s32 26, %v1778_v3  ;;  %v310_v5 = vadd.s32 52, %v1778_v3  ;;  %v275_v7 = vadd.s32 26, %v1784_v6  ;;  %v311_v8 = vadd.s32 52, %v1784_v6 }
  0x15   : > { %v346_v9 = vadd.s32 78, %v1778_v3  ;;  %v347_v10 = vadd.s32 78, %v1784_v6  ;;  %v382_v11 = vadd.s32 104, %v1778_v3  ;;  %v419_v14 = vadd.s32 130, %v1784_v6 }
  0x16   : > { %278 = vperm.xlu1 %1606, %v274_v4   ;;  %314 = vperm.xlu2 %1607, %v310_v5   ;;  %v383_v15 = vadd.s32 104, %v1784_v6  ;;  %v418_v16 = vadd.s32 130, %v1778_v3  ;;  %v526_v18 = vadd.s32 208, %v1778_v3  ;;  %v454_v19 = vadd.s32 156, %v1778_v3  ;;  %v1548_v4 = vld [vmem:[#allocation2 + $0xe0] sm:$0xff] }
  0x17   : > { %v455_v20 = vadd.s32 156, %v1784_v6  ;;  %v599_v23 = vadd.s32 260, %v1784_v6  ;;  %v490_v24 = vadd.s32 182, %v1778_v3  ;;  %v491_v25 = vadd.s32 182, %v1784_v6 }
  0x18   : > { %v706_v28 = vadd.s32 338, %v1778_v3  ;;  %v527_v29 = vadd.s32 208, %v1784_v6  ;;  %v562_v30 = vadd.s32 234, %v1778_v3  ;;  %v563_v33 = vadd.s32 234, %v1784_v6 }
  0x19   : > { %v598_v34 = vadd.s32 260, %v1778_v3  ;;  %v634_v36 = vadd.s32 286, %v1778_v3  ;;  %v635_v37 = vadd.s32 286, %v1784_v6  ;;  %v276_v38 = vadd.s32 26, %v1823_v35 }
  0x1a   : > { %v670_v40 = vadd.s32 312, %v1778_v3  ;;  %v671_v41 = vadd.s32 312, %v1784_v6  ;;  %v707_v43 = vadd.s32 338, %v1784_v6  ;;  %v742_v44 = vadd.s32 364, %v1778_v3 }
  0x1b   : > { %v456_v45 = vadd.s32 156, %v1823_v35  ;;  %v743_v47 = vadd.s32 364, %v1784_v6  ;;  %v312_v49 = vadd.s32 52, %v1823_v35  ;;  %v348_v54 = vadd.s32 78, %v1823_v35 }
  0x1c   : > { %257 = vperm.xlu0 %1605, %v1784_v6   ;;  %v636_v55 = vadd.s32 286, %v1823_v35  ;;  %v384_v58 = vadd.s32 104, %v1823_v35  ;;  %v420_v61 = vadd.s32 130, %v1823_v35 }
  0x1e   : > { %281 = vperm.xlu1 %1606, %v275_v7   ;;  %317 = vperm.xlu2 %1607, %v311_v8   ;;  %v564_v8 = vadd.s32 234, %v1823_v35 }
  0x24   : > { %1608 = vset.pattern.permute.xlu0 %v1710_v12 }
  0x25   : > { %350 = vperm.xlu0 %1608, %v346_v9  }
  0x26   : > { %1609 = vset.pattern.permute.xlu1 %v1710_v12  ;;  %1610 = vset.pattern.permute.xlu2 %v1711_v13 }
  0x27   : > { %353 = vperm.xlu1 %1609, %v347_v10   ;;  %386 = vperm.xlu2 %1610, %v382_v11   ;;  %v528_v11 = vadd.s32 208, %v1823_v35 }
  0x2d   : > { %1613 = vset.pattern.permute.xlu0 %v1712_v17 }
  0x2e   : > { %425 = vperm.xlu0 %1613, %v419_v14  }
  0x2f   : > { %1611 = vset.pattern.permute.xlu1 %v1711_v13  ;;  %1612 = vset.pattern.permute.xlu2 %v1712_v17 }
  0x30   : > { %389 = vperm.xlu1 %1611, %v383_v15   ;;  %422 = vperm.xlu2 %1612, %v418_v16   ;;  %v2726_v15 = vmov 0  ;;  %v600_v16 = vadd.s32 260, %v1823_v35 }
  0x36   : > { %1618 = vset.pattern.permute.xlu0 %v1713_v21 }
  0x37   : > { %530 = vperm.xlu0 %1618, %v526_v18   ;;  %v2728_v18 = vmov 0 }
  0x38   : > { %1614 = vset.pattern.permute.xlu1 %v1714_v22  ;;  %1615 = vset.pattern.permute.xlu2 %v1714_v22 }
  0x39   : > { %458 = vperm.xlu1 %1614, %v454_v19   ;;  %461 = vperm.xlu2 %1615, %v455_v20   ;;  %v744_v19 = vadd.s32 364, %v1823_v35 }
  0x3f   : > { %1623 = vset.pattern.permute.xlu0 %v1715_v26 }
  0x40   : > { %605 = vperm.xlu0 %1623, %v599_v23   ;;  %v2732_v23 = vmov 0 }
  0x41   : > { %1616 = vset.pattern.permute.xlu1 %v1716_v27  ;;  %1617 = vset.pattern.permute.xlu2 %v1716_v27 }
  0x42   : > { %494 = vperm.xlu1 %1616, %v490_v24   ;;  %497 = vperm.xlu2 %1617, %v491_v25   ;;  %v708_v24 = vadd.s32 338, %v1823_v35 }
  0x48   : > { %1628 = vset.pattern.permute.xlu0 %v1717_v31 }
  0x49   : > { %710 = vperm.xlu0 %1628, %v706_v28   ;;  %v2736_v28 = vmov 0 }
  0x4a   : > { %1619 = vset.pattern.permute.xlu1 %v1713_v21  ;;  %1620 = vset.pattern.permute.xlu2 %v1718_v32 }
  0x4b   : > { %533 = vperm.xlu1 %1619, %v527_v29   ;;  %566 = vperm.xlu2 %1620, %v562_v30   ;;  %v1529_v29 = vld [vmem:[#allocation2 + $0x48] sm:$0xff] }
  0x51   : > { %1633 = vset.pattern.permute.xlu0 %v1708_v1  ;;  %v1540_v1 = vld [vmem:[#allocation2 + $0xa0] sm:$0xff] }
  0x52   : > { %284 = vperm.xlu0 %1633, %v276_v38   ;;  %v1526_v38 = vld [vmem:[#allocation2 + $0x30] sm:$0xff] }
  0x53   : > { %1621 = vset.pattern.permute.xlu1 %v1718_v32  ;;  %1622 = vset.pattern.permute.xlu2 %v1715_v26 }
  0x54   : > { %569 = vperm.xlu1 %1621, %v563_v33   ;;  %602 = vperm.xlu2 %1622, %v598_v34   ;;  %v1535_v33 = vld [vmem:[#allocation2 + $0x78] sm:$0xff]  ;;  %v1545_v34 = vld [vmem:[#allocation2 + $0xc8] sm:$0xff] }
  0x55   : > { %1088 = vmatpush.bf16.msra.mxu1 %v1535_v33  ;;  %v1537_v33 = vld [vmem:[#allocation2 + $0x88] sm:$0xff] }
  0x5a   : > { %1638 = vset.pattern.permute.xlu0 %v1714_v22 }
  0x5b   : > { %464 = vperm.xlu0 %1638, %v456_v45   ;;  %v1544_v45 = vld [vmem:[#allocation2 + $0xc0] sm:$0xff] }
  0x5c   : > { %1624 = vset.pattern.permute.xlu1 %v1719_v39  ;;  %1625 = vset.pattern.permute.xlu2 %v1719_v39 }
  0x5d   : > { %638 = vperm.xlu1 %1624, %v634_v36   ;;  %641 = vperm.xlu2 %1625, %v635_v37   ;;  %v1551_v36 = vld [vmem:[#allocation2 + $0xf8] sm:$0xff]  ;;  %v1520_v37 = vld [vmem:[#allocation2] sm:$0xff] }
  0x5e   : > { %1124 = vmatpush.bf16.msra.mxu3 %v1551_v36  ;;  %v2860_v36 = vmov 0 }
  0x63   : > { %1643 = vset.pattern.permute.xlu0 %v1719_v39  ;;  %v1534_v39 = vld [vmem:[#allocation2 + $0x70] sm:$0xff] }
  0x64   : > { %644 = vperm.xlu0 %1643, %v636_v55   ;;  %1089 = vmatpush.bf16.msra.mxu1 %v1534_v39  ;;  %v1549_v55 = vld [vmem:[#allocation2 + $0xe8] sm:$0xff] }
  0x65   : > { %1626 = vset.pattern.permute.xlu1 %v1720_v42  ;;  %1627 = vset.pattern.permute.xlu2 %v1720_v42 }
  0x66   : > { %674 = vperm.xlu1 %1626, %v670_v40   ;;  %677 = vperm.xlu2 %1627, %v671_v41   ;;  %v1542_v41 = vld [vmem:[#allocation2 + $0xb0] sm:$0xff] }
  0x68   : > { %1090 = vmatpush.bf16.msra.mxu1 %v1533_v48  ;;  %v2820_v48 = vmov 0 }
  0x6c   : > { %1647 = vset.pattern.permute.xlu0 %v1721_v46 }
  0x6e   : > { %1629 = vset.pattern.permute.xlu1 %v1717_v31  ;;  %1630 = vset.pattern.permute.xlu2 %v1721_v46 }
  0x6f   : > { %713 = vperm.xlu1 %1629, %v707_v43   ;;  %746 = vperm.xlu2 %1630, %v742_v44  }
  0x70   : > { %v315_v50 = vpop.permute.xlu2 %314 }
  0x71   : > { %vm322_vm9 = vcmp.eq.s32.totalorder %v1842_v51, %v315_v50  ;;  %vm323_vm11 = vcmp.eq.s32.totalorder %v1847_v52, %v315_v50  ;;  %vm324_vm13 = vcmp.eq.s32.totalorder %v1850_v53, %v315_v50  ;;  %vm325_vm15 = vcmp.eq.s32.totalorder %v1855_v56, %v315_v50 }
  0x77   : > { %1631 = vset.pattern.permute.xlu1 %v1721_v46  ;;  %1632 = vset.pattern.permute.xlu2 %v1707_v0  ;;  %v492_v0 = vadd.s32 182, %v1823_v35 }
  0x78   : > { %749 = vperm.xlu1 %1631, %v743_v47   ;;  %260 = vperm.xlu2 %1632, %v1823_v35   ;;  %v1859_v59 = vpop.permute.xlu2 %317  ;;  %v1525_v47 = vld [vmem:[#allocation2 + $0x28] sm:$0xff] }
  0x80   : > { %1634 = vset.pattern.permute.xlu1 %v1709_v2  ;;  %1635 = vset.pattern.permute.xlu2 %v1710_v12  ;;  %v2724_v12 = vmov 0 }
  0x81   : > { %320 = vperm.xlu1 %1634, %v312_v49   ;;  %356 = vperm.xlu2 %1635, %v348_v54   ;;  %v1893_v5 = vpop.permute.xlu2 %386  ;;  %v1541_v54 = vld [vmem:[#allocation2 + $0xa8] sm:$0xff] }
  0x86   : > { %v255_v57 = vpop.permute.xlu0 %254 }
  0x87   : > { %vm262_vm0 = vcmp.eq.s32.totalorder %v1842_v51, %v255_v57  ;;  %vm263_vm1 = vcmp.eq.s32.totalorder %v1847_v52, %v255_v57  ;;  %vm264_vm2 = vcmp.eq.s32.totalorder %v1850_v53, %v255_v57  ;;  %vm265_vm6 = vcmp.eq.s32.totalorder %v1855_v56, %v255_v57 }
  0x88   : > { %v279_v60 = vpop.permute.xlu1 %278  ;;  %v2831_v57 = vmov 0 }
  0x89   : > { %vm286_vm3 = vcmp.eq.s32.totalorder %v1842_v51, %v279_v60  ;;  %vm287_vm4 = vcmp.eq.s32.totalorder %v1847_v52, %v279_v60  ;;  %vm288_vm5 = vcmp.eq.s32.totalorder %v1850_v53, %v279_v60  ;;  %1636 = vset.pattern.permute.xlu1 %v1711_v13  ;;  %vm289_vm7 = vcmp.eq.s32.totalorder %v1855_v56, %v279_v60 }
  0x8a   : > { %vm298_vm8 = vmor %vm262_vm0, %vm286_vm3  ;;  %392 = vperm.xlu1 %1636, %v384_v58   ;;  %1637 = vset.pattern.permute.xlu2 %v1712_v17  ;;  %v1912_v10 = vpop.permute.xlu2 %422  ;;  %v672_v13 = vadd.s32 312, %v1823_v35  ;;  %v1543_v35 = vld [vmem:[#allocation2 + $0xb8] sm:$0xff] }
  0x8b   : > { %vm299_vm10 = vmor %vm263_vm1, %vm287_vm4  ;;  %428 = vperm.xlu2 %1637, %v420_v61   ;;  %1106 = vmatpush.bf16.msra.mxu2 %v1543_v35  ;;  %v2805_v35 = vmov 0 }
  0x8c   : > { %vm300_vm12 = vmor %vm264_vm2, %vm288_vm5 }
  0x8d   : > { %vm301_vm14 = vmor %vm265_vm6, %vm289_vm7  ;;  %vm328_vm6 = vcmp.eq.s32.totalorder %v1850_v53, %v1859_v59 }
  0x8e   : > { %v258_v62 = vpop.permute.xlu0 %257  ;;  %vm1874_vm0 = vmor %vm298_vm8, %vm322_vm9 }
  0x8f   : > { %vm1879_vm3 = vmor %vm299_vm10, %vm323_vm11  ;;  %vm268_vm4 = vcmp.eq.s32.totalorder %v1850_v53, %v258_v62  ;;  %vm269_vm10 = vcmp.eq.s32.totalorder %v1855_v56, %v258_v62  ;;  %1107 = vmatpush.bf16.msra.mxu2 %v1542_v41  ;;  %v1528_v41 = vld [vmem:[#allocation2 + $0x40] sm:$0xff] }
  0x90   : > { %v282_v2 = vpop.permute.xlu1 %281  ;;  %vm1884_vm1 = vmor %vm300_vm12, %vm324_vm13  ;;  %vm397_vm12 = vcmp.eq.s32.totalorder %v1855_v56, %v1893_v5 }
  0x91   : > { %vm1889_vm2 = vmor %vm301_vm14, %vm325_vm15  ;;  %vm292_vm5 = vcmp.eq.s32.totalorder %v1850_v53, %v282_v2  ;;  %vm293_vm11 = vcmp.eq.s32.totalorder %v1855_v56, %v282_v2  ;;  %vm329_vm14 = vcmp.eq.s32.totalorder %v1855_v56, %v1859_v59 }
  0x92   : > { %1639 = vset.pattern.permute.xlu1 %v1716_v27  ;;  %vm304_vm7 = vmor %vm268_vm4, %vm292_vm5  ;;  %v2734_v27 = vmov 0 }
  0x93   : > { %500 = vperm.xlu1 %1639, %v492_v0   ;;  %vm1900_vm8 = vmor %vm304_vm7, %vm328_vm6  ;;  %1640 = vset.pattern.permute.xlu2 %v1713_v21  ;;  %v1938_v17 = vpop.permute.xlu2 %461  ;;  %v1532_v0 = vld [vmem:[#allocation2 + $0x60] sm:$0xff]  ;;  %v1530_v21 = vld [vmem:[#allocation2 + $0x50] sm:$0xff] }
  0x94   : > { %vm305_vm15 = vmor %vm269_vm10, %vm293_vm11  ;;  %536 = vperm.xlu2 %1640, %v528_v11   ;;  %1108 = vmatpush.bf16.msra.mxu2 %v1541_v54  ;;  %v1539_v11 = vld [vmem:[#allocation2 + $0x98] sm:$0xff]  ;;  %v2825_v54 = vmov 0 }
  0x95   : > { %vm341_vm5 = vmor %vm305_vm15, %vm329_vm14  ;;  %vm291_vm14 = vcmp.eq.s32.totalorder %v1847_v52, %v282_v2  ;;  %vm326_vm15 = vcmp.eq.s32.totalorder %v1842_v51, %v1859_v59  ;;  %1091 = vmatpush.bf16.msra.mxu1 %v1532_v0 }
  0x97   : > { %v351_v6 = vpop.permute.xlu0 %350 }
  0x98   : > { %vm361_vm9 = vcmp.eq.s32.totalorder %v1855_v56, %v351_v6  ;;  %1109 = vmatpush.bf16.msra.mxu2 %v1540_v1 }
  0x99   : > { %v1906_v9 = vpop.permute.xlu1 %353  ;;  %vm373_vm13 = vmor %vm1889_vm2, %vm361_vm9 }
  0x9a   : > { %vm1921_vm4 = vmor %vm373_vm13, %vm397_vm12  ;;  %vm364_vm6 = vcmp.eq.s32.totalorder %v1850_v53, %v1906_v9  ;;  %vm365_vm2 = vcmp.eq.s32.totalorder %v1855_v56, %v1906_v9  ;;  %vm290_vm12 = vcmp.eq.s32.totalorder %v1842_v51, %v282_v2  ;;  %vm267_vm13 = vcmp.eq.s32.totalorder %v1847_v52, %v258_v62 }
  0x9b   : > { %1641 = vset.pattern.permute.xlu1 %v1718_v32  ;;  %v2725_v12 = vsel %vm1921_vm4, 4294967295, %v2724_v12  ;;  %vm1932_vm7 = vmor %vm1900_vm8, %vm364_vm6  ;;  %vm266_vm8 = vcmp.eq.s32.totalorder %v1842_v51, %v258_v62  ;;  %vm327_vm6 = vcmp.eq.s32.totalorder %v1847_v52, %v1859_v59  ;;  %v1527_v32 = vld [vmem:[#allocation2 + $0x38] sm:$0xff]  ;;  %v1524_v62 = vld [vmem:[#allocation2 + $0x20] sm:$0xff]  ;;  %v2834_v59 = vmov 0 }
  0x9c   : > { %572 = vperm.xlu1 %1641, %v564_v8   ;;  %v2727_v15 = vsel %vm1932_vm7, 4294967295, %v2726_v15  ;;  %vm377_vm9 = vmor %vm341_vm5, %vm365_vm2  ;;  %1642 = vset.pattern.permute.xlu2 %v1715_v26  ;;  %v1964_v22 = vpop.permute.xlu2 %497  ;;  %v1523_v8 = vld [vmem:[#allocation2 + $0x18] sm:$0xff] }
  0x9d   : > { %608 = vperm.xlu2 %1642, %v600_v16   ;;  %vm302_vm5 = vmor %vm266_vm8, %vm290_vm12  ;;  %vm394_vm12 = vcmp.eq.s32.totalorder %v1842_v51, %v1893_v5  ;;  %1070 = vmatpush.bf16.msra.mxu0 %v1527_v32 }
  0x9e   : > { %vm303_vm2 = vmor %vm267_vm13, %vm291_vm14  ;;  %vm362_vm14 = vcmp.eq.s32.totalorder %v1842_v51, %v1906_v9  ;;  %1110 = vmatpush.bf16.msra.mxu2 %v1539_v11 }
  0x9f   : > { %vm1960_vm4 = vmor %vm302_vm5, %vm326_vm15  ;;  %vm395_vm15 = vcmp.eq.s32.totalorder %v1847_v52, %v1893_v5 }
  0xa0   : > { %vm1967_vm8 = vmor %vm303_vm2, %vm327_vm6  ;;  %vm363_vm6 = vcmp.eq.s32.totalorder %v1847_v52, %v1906_v9  ;;  %vm396_vm2 = vcmp.eq.s32.totalorder %v1850_v53, %v1893_v5  ;;  %v426_v25 = vpop.permute.xlu0 %425  ;;  %v1722_v5 = vmov 0.0  }
  0xa1   : > { %v2733_v23 = vsel %vm1967_vm8, 4294967295, %v2732_v23  ;;  %1071 = vmatpush.bf16.msra.mxu0 %v1526_v38  ;;  %v2809_v38 = vmov 0 }
  0xa2   : > { %v390_v14 = vpop.permute.xlu1 %389 }
  0xa3   : > { %vm401_vm10 = vcmp.eq.s32.totalorder %v1855_v56, %v390_v14 }
  0xa4   : > { %1644 = vset.pattern.permute.xlu1 %v1720_v42  ;;  %vm1942_vm11 = vmor %vm377_vm9, %vm401_vm10  ;;  %vm358_vm9 = vcmp.eq.s32.totalorder %v1842_v51, %v351_v6  ;;  %vm359_vm10 = vcmp.eq.s32.totalorder %v1847_v52, %v351_v6  ;;  %v1550_v42 = vld [vmem:[#allocation2 + $0xf0] sm:$0xff] }
  0xa5   : > { %680 = vperm.xlu1 %1644, %v672_v13   ;;  %v2729_v18 = vsel %vm1942_vm11, 4294967295, %v2728_v18  ;;  %vm360_vm11 = vcmp.eq.s32.totalorder %v1850_v53, %v351_v6  ;;  %1645 = vset.pattern.permute.xlu2 %v1717_v31  ;;  %vm370_vm13 = vmor %vm1874_vm0, %vm358_vm9  ;;  %vm398_vm0 = vcmp.eq.s32.totalorder %v1842_v51, %v390_v14  ;;  %v2012_v30 = vpop.permute.xlu2 %566  ;;  %v1558_v31 = vld [vmem:[%s2711_s3 + $0x30] sm:$0xff] }
  0xa6   : > { %vm371_vm5 = vmor %vm1879_vm3, %vm359_vm10  ;;  %716 = vperm.xlu2 %1645, %v708_v24   ;;  %vm399_vm10 = vcmp.eq.s32.totalorder %v1847_v52, %v390_v14  ;;  %1125 = vmatpush.bf16.msra.mxu3 %v1550_v42  ;;  %v1538_v24 = vld [vmem:[#allocation2 + $0x90] sm:$0xff]  ;;  %v1536_v42 = vld [vmem:[#allocation2 + $0x80] sm:$0xff] }
  0xa7   : > { %vm372_vm7 = vmor %vm1884_vm1, %vm360_vm11  ;;  %vm2738_vm1 = vnez %v2733_v23  ;;  %1072 = vmatpush.bf16.msra.mxu0 %v1525_v47  ;;  %1111 = vmatpush.bf16.msra.mxu2 %v1538_v24 }
  0xa8   : > { %vm1992_vm9 = vmor %vm370_vm13, %vm394_vm12  ;;  %vm400_vm12 = vcmp.eq.s32.totalorder %v1850_v53, %v390_v14  ;;  %v1547_v14 = vld [vmem:[#allocation2 + $0xd8] sm:$0xff] }
  0xa9   : > { %v2735_v27 = vsel %vm1992_vm9, 4294967295, %v2734_v27  ;;  %vm374_vm3 = vmor %vm1960_vm4, %vm362_vm14  ;;  %vm434_vm4 = vcmp.eq.s32.totalorder %v1842_v51, %v426_v25  ;;  %v2149_v3 = vpop.permute.xlu0 %530 }
  0xaa   : > { %vm1999_vm8 = vmor %vm371_vm5, %vm395_vm15  ;;  %vm435_vm5 = vcmp.eq.s32.totalorder %v1847_v52, %v426_v25  ;;  %vm2741_vm15 = vnez %v2727_v15  ;;  %1126 = vmatpush.bf16.msra.mxu3 %v1549_v55  ;;  %v2828_v55 = vmov 0 }
  0xab   : > { %v1951_v20 = vpop.permute.xlu1 %458  ;;  %v2737_v28 = vsel %vm1999_vm8, 4294967295, %v2736_v28  ;;  %vm375_vm11 = vmor %vm2738_vm1, %vm363_vm6  ;;  %vm436_vm6 = vcmp.eq.s32.totalorder %v1850_v53, %v426_v25  ;;  %vm430_vm1 = vcmp.eq.s32.totalorder %v1842_v51, %v1912_v10  ;;  %1073 = vmatpush.bf16.msra.mxu0 %v1524_v62  ;;  %1112 = vmatpush.bf16.msra.mxu2 %v1537_v33  ;;  %v2838_v62 = vmov 0 }
  0xac   : > { %vm2006_vm13 = vmor %vm372_vm7, %vm396_vm2  ;;  %vm437_vm7 = vcmp.eq.s32.totalorder %v1855_v56, %v426_v25  ;;  %v1546_v25 = vld [vmem:[#allocation2 + $0xd0] sm:$0xff] }
  0xad   : > { %1646 = vset.pattern.permute.xlu1 %v1721_v46  ;;  %vm410_vm9 = vmor %vm374_vm3, %vm398_vm0  ;;  %vm470_vm0 = vcmp.eq.s32.totalorder %v1842_v51, %v1938_v17  ;;  %v2816_v46 = vmov 0 }
  0xae   : > { %752 = vperm.xlu1 %1646, %v744_v19   ;;  %vm411_vm14 = vmor %vm375_vm11, %vm399_vm10  ;;  %vm471_vm10 = vcmp.eq.s32.totalorder %v1847_v52, %v1938_v17  ;;  %vm472_vm11 = vcmp.eq.s32.totalorder %v1850_v53, %v1938_v17  ;;  %v2123_v60 = vpop.permute.xlu2 %602  ;;  %1127 = vmatpush.bf16.msra.mxu3 %v1548_v4  ;;  %v1522_v19 = vld [vmem:[#allocation2 + $0x10] sm:$0xff] }
  0xaf   : > { %vm2016_vm8 = vmor %vm2741_vm15, %vm400_vm12  ;;  %vm2750_vm12 = vnez %v2729_v18  ;;  %vm473_vm15 = vcmp.eq.s32.totalorder %v1855_v56, %v1938_v17  ;;  %v2791_v18 = vmov 0  ;;  %1074 = vmatpush.bf16.msra.mxu0 %v1523_v8  ;;  %1113 = vmatpush.bf16.msra.mxu2 %v1536_v42 }
  0xb0   : > { %vm2022_vm2 = vmor %vm410_vm9, %vm434_vm4 }
  0xb1   : > { %vm2028_vm3 = vmor %vm411_vm14, %vm435_vm5  ;;  %vm432_vm5 = vcmp.eq.s32.totalorder %v1850_v53, %v1912_v10 }
  0xb2   : > { %vm2036_vm9 = vmor %vm2016_vm8, %vm436_vm6  ;;  %vm431_vm8 = vcmp.eq.s32.totalorder %v1847_v52, %v1912_v10  ;;  %1128 = vmatpush.bf16.msra.mxu3 %v1547_v14  ;;  %v2301_v32 = vpop.permute.xlu0 %605 }
  0xb3   : > { %vm2048_vm4 = vmor %vm2750_vm12, %vm437_vm7  ;;  %vm433_vm7 = vcmp.eq.s32.totalorder %v1855_v56, %v1912_v10  ;;  %v1531_v10 = vld [vmem:[#allocation2 + $0x58] sm:$0xff]  ;;  %1075 = vmatpush.bf16.msra.mxu0 %v1522_v19 }
  0xb4   : > { %v1990_v26 = vpop.permute.xlu1 %494  ;;  %vm2061_vm14 = vmor %vm2022_vm2, %vm470_vm0  ;;  %vm2759_vm0 = vnez %v2735_v27  ;;  %1092 = vmatpush.bf16.msra.mxu1 %v1531_v10  ;;  %v1521_v27 = vld [vmem:[#allocation2 + $0x8] sm:$0xff] }
  0xb5   : > { %vm2071_vm6 = vmor %vm2028_vm3, %vm471_vm10  ;;  %vm2762_vm10 = vnez %v2737_v28  ;;  %v1559_v28 = vld [vmem:[%s2711_s3 + $0x38] sm:$0xff] }
  0xb6   : > { %vm2079_vm2 = vmor %vm2036_vm9, %vm472_vm11  ;;  %vm466_vm11 = vcmp.eq.s32.totalorder %v1842_v51, %v1951_v20  ;;  %1129 = vmatpush.bf16.msra.mxu3 %v1546_v25 }
  0xb7   : > { %vm2088_vm3 = vmor %vm2759_vm0, %vm430_vm1  ;;  %vm2769_vm0 = vnez %v2725_v12  ;;  %v2231_v17 = vpop.permute.xlu2 %641  ;;  %1076 = vmatpush.bf16.msra.mxu0 %v1521_v27 }
  0xb8   : > { %vm2097_vm9 = vmor %vm2762_vm10, %vm431_vm8  ;;  %vm467_vm8 = vcmp.eq.s32.totalorder %v1847_v52, %v1951_v20  ;;  %vm502_vm10 = vcmp.eq.s32.totalorder %v1842_v51, %v1990_v26  ;;  %1093 = vmatpush.bf16.msra.mxu1 %v1530_v21 }
  0xb9   : > { %vm2108_vm1 = vmor %vm2048_vm4, %vm473_vm15  ;;  %vm468_vm15 = vcmp.eq.s32.totalorder %v1850_v53, %v1951_v20 }
  0xba   : > { %vm2117_vm12 = vmor %vm2006_vm13, %vm432_vm5  ;;  %vm469_vm13 = vcmp.eq.s32.totalorder %v1855_v56, %v1951_v20  ;;  %1130 = vmatpush.bf16.msra.mxu3 %v1545_v34 }
  0xbb   : > { %vm2127_vm4 = vmor %vm2769_vm0, %vm433_vm7  ;;  %1077 = vmatpush.bf16.msra.mxu0 %v1520_v37  ;;  %v2393_v49 = vpop.permute.xlu0 %710 }
  0xbc   : > { %vm2137_vm5 = vmor %vm2088_vm3, %vm466_vm11  ;;  %vm506_vm3 = vcmp.eq.s32.totalorder %v1842_v51, %v1964_v22  ;;  %1094 = vmatpush.bf16.msra.mxu1 %v1529_v29 }
  0xbd   : > { %v2052_v44 = vpop.permute.xlu1 %533  ;;  %vm2143_vm7 = vmor %vm2097_vm9, %vm467_vm8  ;;  %vm503_vm9 = vcmp.eq.s32.totalorder %v1847_v52, %v1990_v26 }
  0xbe   : > { %vm2158_vm11 = vmor %vm2117_vm12, %vm468_vm15  ;;  %vm504_vm12 = vcmp.eq.s32.totalorder %v1850_v53, %v1990_v26  ;;  %vm508_vm15 = vcmp.eq.s32.totalorder %v1850_v53, %v1964_v22  ;;  %1131 = vmatpush.bf16.msra.mxu3 %v1544_v45  ;;  %v1557_v45 = vld [vmem:[%s2711_s3 + $0x28] sm:$0xff] }
  0xbf   : > { %vm2173_vm0 = vmor %vm2127_vm4, %vm469_vm13  ;;  %1215 = vmatpush.bf16.msrb.mxu0 %v1559_v28 }
  0xc0   : > { %vm2183_vm8 = vmor %vm2137_vm5, %vm502_vm10  ;;  %vm505_vm5 = vcmp.eq.s32.totalorder %v1855_v56, %v1990_v26  ;;  %v2352_v40 = vpop.permute.xlu2 %677  ;;  %1095 = vmatpush.bf16.msra.mxu1 %v1528_v41 }
  0xc1   : > { %vm2194_vm13 = vmor %vm2061_vm14, %vm506_vm3  ;;  %vm2786_vm3 = vcmp.eq.s32.totalorder %v1847_v52, %v1964_v22 }
  0xc2   : > { %vm2205_vm10 = vmor %vm2143_vm7, %vm503_vm9  ;;  %vm539_vm9 = vcmp.eq.s32.totalorder %v1847_v52, %v2149_v3 }
  0xc3   : > { %vm2216_vm4 = vmor %vm2071_vm6, %vm2786_vm3  ;;  %1216 = vmatpush.bf16.msrb.mxu0 %v1558_v31 }
  0xc4   : > { %vm2225_vm7 = vmor %vm2158_vm11, %vm504_vm12  ;;  %vm574_vm11 = vcmp.eq.s32.totalorder %v1842_v51, %v2012_v30  ;;  %vm2793_vm12 = vcmp.eq.s32.totalorder %v1842_v51, %v2149_v3  ;;  %1560 = vmatpush.bf16.msrb.mxu1 %v1559_v28 }
  0xc5   : > { %vm2238_vm6 = vmor %vm2079_vm2, %vm508_vm15  ;;  %vm540_vm2 = vcmp.eq.s32.totalorder %v1850_v53, %v2149_v3  ;;  %vm2796_vm15 = vcmp.eq.s32.totalorder %v1855_v56, %v1964_v22 }
  0xc6   : > { %v2164_v6 = vpop.permute.xlu1 %569  ;;  %v2792_v18 = vsel %vm2238_vm6, 4294967295, %v2791_v18  ;;  %vm550_vm3 = vmor %vm2183_vm8, %vm2793_vm12  ;;  %vm610_vm6 = vcmp.eq.s32.totalorder %v1842_v51, %v2123_v60 }
  0xc7   : > { %vm2251_vm14 = vmor %vm2173_vm0, %vm505_vm5  ;;  %vm575_vm0 = vcmp.eq.s32.totalorder %v1847_v52, %v2012_v30  ;;  %1217 = vmatpush.bf16.msrb.mxu0 %v1557_v45 }
  0xc8   : > { %vm2262_vm8 = vmor %vm2108_vm1, %vm2796_vm15  ;;  %vm542_vm15 = vcmp.eq.s32.totalorder %v1842_v51, %v2052_v44  ;;  %1561 = vmatpush.bf16.msrb.mxu1 %v1558_v31 }
  0xc9   : > { %vm551_vm5 = vmor %vm2205_vm10, %vm539_vm9  ;;  %vm541_vm10 = vcmp.eq.s32.totalorder %v1855_v56, %v2149_v3  ;;  %v2412_v50 = vpop.permute.xlu2 %746 }
  0xca   : > { %vm586_vm12 = vmor %vm550_vm3, %vm574_vm11  ;;  %vm576_vm11 = vcmp.eq.s32.totalorder %v1850_v53, %v2012_v30 }
  0xcb   : > { %vm2277_vm1 = vmor %vm2225_vm7, %vm540_vm2  ;;  %vm543_vm7 = vcmp.eq.s32.totalorder %v1847_v52, %v2052_v44  ;;  %vm544_vm2 = vcmp.eq.s32.totalorder %v1850_v53, %v2052_v44 }
  0xcc   : > { %vm2287_vm9 = vmor %vm551_vm5, %vm575_vm0  ;;  %1562 = vmatpush.bf16.msrb.mxu1 %v1557_v45 }
  0xcd   : > { %vm2295_vm3 = vmor %vm586_vm12, %vm610_vm6  ;;  %vm578_vm6 = vcmp.eq.s32.totalorder %v1842_v51, %v2164_v6  ;;  %vm545_vm12 = vcmp.eq.s32.totalorder %v1855_v56, %v2052_v44  ;;  %v1554_v44 = vld [vmem:[%s2711_s3 + $0x10] sm:$0xff] }
  0xce   : > { %vm554_vm0 = vmor %vm2194_vm13, %vm542_vm15  ;;  %vm611_vm15 = vcmp.eq.s32.totalorder %v1847_v52, %v2123_v60 }
  0xcf   : > { %v2283_v26 = vpop.permute.xlu1 %638  ;;  %vm2315_vm5 = vmor %vm2251_vm14, %vm541_vm10 }
  0xd0   : > { %v2806_v35 = vsel %vm2315_vm5, 4294967295, %v2805_v35  ;;  %vm2326_vm13 = vmor %vm2216_vm4, %vm543_vm7  ;;  %vm2811_vm4 = vnez %v2792_v18  ;;  %vm579_vm7 = vcmp.eq.s32.totalorder %v1847_v52, %v2164_v6 }
  0xd1   : > { %vm2335_vm14 = vmor %vm2277_vm1, %vm576_vm11  ;;  %vm614_vm11 = vcmp.eq.s32.totalorder %v1842_v51, %v2301_v32 }
  0xd2   : > { %v2810_v38 = vsel %vm2335_vm14, 4294967295, %v2809_v38  ;;  %vm2346_vm10 = vmor %vm2811_vm4, %vm544_vm2  ;;  %vm580_vm4 = vcmp.eq.s32.totalorder %v1850_v53, %v2164_v6  ;;  %v2506_v1 = vpop.permute.xlu2 %260 }
  0xd3   : > { %vm590_vm1 = vmor %vm554_vm0, %vm578_vm6 }
  0xd4   : > { %vm2361_vm2 = vmor %vm2262_vm8, %vm545_vm12  ;;  %vm646_vm8 = vcmp.eq.s32.totalorder %v1842_v51, %v2283_v26  ;;  %vm650_vm12 = vcmp.eq.s32.totalorder %v1842_v51, %v2231_v17 }
  0xd5   : > { %vm2369_vm0 = vmor %vm2287_vm9, %vm611_vm15  ;;  %vm581_vm15 = vcmp.eq.s32.totalorder %v1855_v56, %v2164_v6 }
  0xd6   : > { %v2817_v46 = vsel %vm2369_vm0, 4294967295, %v2816_v46  ;;  %vm2375_vm6 = vmor %vm2326_vm13, %vm579_vm7  ;;  %vm615_vm7 = vcmp.eq.s32.totalorder %v1847_v52, %v2301_v32 }
  0xd7   : > { %vm626_vm14 = vmor %vm590_vm1, %vm614_vm11  ;;  %vm616_vm11 = vcmp.eq.s32.totalorder %v1850_v53, %v2301_v32 }
  0xd8   : > { %v2383_v47 = vpop.permute.xlu1 %674  ;;  %vm2387_vm9 = vmor %vm2346_vm10, %vm580_vm4  ;;  %vm577_vm10 = vcmp.eq.s32.totalorder %v1855_v56, %v2012_v30  ;;  %vm686_vm4 = vcmp.eq.s32.totalorder %v1842_v51, %v2352_v40  ;;  %v2822_v30 = vmov 0 }
  0xd9   : > { %v2821_v48 = vsel %vm2387_vm9, 4294967295, %v2820_v48  ;;  %vm682_vm13 = vcmp.eq.s32.totalorder %v1842_v51, %v2383_v47  ;;  %vm658_vm1 = vmor %vm2295_vm3, %vm646_vm8  ;;  %vm612_vm9 = vcmp.eq.s32.totalorder %v1850_v53, %v2123_v60  ;;  %vm718_vm3 = vcmp.eq.s32.totalorder %v1842_v51, %v2393_v49 }
  0xda   : > { %vm662_vm0 = vmor %vm626_vm14, %vm650_vm12  ;;  %vm647_vm14 = vcmp.eq.s32.totalorder %v1847_v52, %v2283_v26 }
  0xdb   : > { %vm694_vm5 = vmor %vm658_vm1, %vm682_vm13  ;;  %vm2824_vm1 = vnez %v2806_v35  ;;  %v357_v16 = vpop.permute.xlu2 %356 }
  0xdc   : > { %vm2418_vm8 = vmor %vm2361_vm2, %vm581_vm15  ;;  %vm651_vm2 = vcmp.eq.s32.totalorder %v1847_v52, %v2231_v17  ;;  %vm2827_vm15 = vnez %v2821_v48  ;;  %v1552_v48 = vld [vmem:[%s2711_s3] sm:$0xff] }
  0xdd   : > { %v2823_v30 = vsel %vm2418_vm8, 4294967295, %v2822_v30  ;;  %vm627_vm12 = vmor %vm2375_vm6, %vm615_vm7  ;;  %vm2830_vm7 = vnez %v2810_v38 }
  0xde   : > { %vm2428_vm13 = vmor %vm2824_vm1, %vm577_vm10  ;;  %vm683_vm10 = vcmp.eq.s32.totalorder %v1847_v52, %v2383_v47 }
  0xdf   : > { %v2826_v54 = vsel %vm2428_vm13, 4294967295, %v2825_v54  ;;  %vm2436_vm8 = vmor %vm2827_vm15, %vm616_vm11  ;;  %vm754_vm11 = vcmp.eq.s32.totalorder %v1842_v51, %v2412_v50  ;;  %vm2833_vm15 = vnez %v2817_v46  ;;  %v1556_v46 = vld [vmem:[%s2711_s3 + $0x20] sm:$0xff] }
  0xe0   : > { %v2829_v55 = vsel %vm2436_vm8, 4294967295, %v2828_v55  ;;  %vm698_vm6 = vmor %vm662_vm0, %vm686_vm4  ;;  %vm687_vm0 = vcmp.eq.s32.totalorder %v1847_v52, %v2352_v40  ;;  %1218 = vmatpush.bf16.msrb.mxu0 %v1556_v46  ;;  %1563 = vmatpush.bf16.msrb.mxu1 %v1556_v46 }
  0xe1   : > { %vm2442_vm1 = vmor %vm2830_vm7, %vm612_vm9  ;;  %v2454_v58 = vpop.permute.xlu1 %713 }
  0xe2   : > { %v2832_v57 = vsel %vm2442_vm1, 4294967295, %v2831_v57  ;;  %vm730_vm13 = vmor %vm694_vm5, %vm718_vm3  ;;  %vm722_vm9 = vcmp.eq.s32.totalorder %v1842_v51, %v2454_v58  ;;  %vm719_vm3 = vcmp.eq.s32.totalorder %v1847_v52, %v2393_v49 }
  0xe3   : > { %vm659_vm8 = vmor %vm2833_vm15, %vm647_vm14  ;;  %vm723_vm14 = vcmp.eq.s32.totalorder %v1847_v52, %v2454_v58 }
  0xe4   : > { %vm663_vm4 = vmor %vm627_vm12, %vm651_vm2  ;;  %vm755_vm12 = vcmp.eq.s32.totalorder %v1847_v52, %v2412_v50 }
  0xe5   : > { %vm2458_vm7 = vmor %vm730_vm13, %vm754_vm11  ;;  %vm617_vm13 = vcmp.eq.s32.totalorder %v1855_v56, %v2301_v32  ;;  %v429_v23 = vpop.permute.xlu2 %428 }
  0xe6   : > { %v2835_v59 = vsel %vm2458_vm7, 4294967295, %v2834_v59  ;;  %vm695_vm5 = vmor %vm659_vm8, %vm683_vm10  ;;  %vm648_vm8 = vcmp.eq.s32.totalorder %v1850_v53, %v2283_v26  ;;  %vm652_vm10 = vcmp.eq.s32.totalorder %v1850_v53, %v2231_v17 }
  0xe7   : > { %vm2464_vm1 = vmor %vm698_vm6, %vm722_vm9  ;;  %vm613_vm6 = vcmp.eq.s32.totalorder %v1855_v56, %v2123_v60  ;;  %vm2842_vm9 = vnez %v2823_v30 }
  0xe8   : > { %vm699_vm15 = vmor %vm663_vm4, %vm687_vm0  ;;  %vm684_vm0 = vcmp.eq.s32.totalorder %v1850_v53, %v2383_v47 }
  0xe9   : > { %vm731_vm2 = vmor %vm695_vm5, %vm719_vm3  ;;  %vm688_vm3 = vcmp.eq.s32.totalorder %v1850_v53, %v2352_v40 }
  0xea   : > { %vm2480_vm11 = vmor %vm699_vm15, %vm723_vm14  ;;  %vm2845_vm14 = vnez %v2832_v57  ;;  %v750_v2 = vpop.permute.xlu1 %749 }
  0xeb   : > { %v2839_v62 = vsel %vm2480_vm11, 4294967295, %v2838_v62  ;;  %vm2486_vm4 = vmor %vm731_vm2, %vm755_vm12  ;;  %vm2846_vm11 = vnez %v2826_v54  ;;  %vm2849_vm12 = vnez %v2829_v55  ;;  %v1648_v54 = vld [vmem:[%s2710_s2] ss:$0 sm:$0xff] }
  0xec   : > { %vm2492_vm5 = vmor %vm2842_vm9, %vm617_vm13  ;;  %vm758_vm9 = vcmp.eq.s32.totalorder %v1842_v51, %v750_v2  ;;  %v1347_v9 = vsel %vm2486_vm4, 1.0, %v1722_v5  ;;  %vm685_vm4 = vcmp.eq.s32.totalorder %v1855_v56, %v2383_v47  ;;  %v1553_v47 = vld [vmem:[%s2711_s3 + $0x8] sm:$0xff] }
  0xed   : > { %vm660_vm15 = vmor %vm2845_vm14, %vm648_vm8  ;;  %vm759_vm8 = vcmp.eq.s32.totalorder %v1847_v52, %v750_v2 }
  0xee   : > { %vm2502_vm7 = vmor %vm2846_vm11, %vm613_vm6  ;;  %vm720_vm6 = vcmp.eq.s32.totalorder %v1850_v53, %v2393_v49  ;;  %v537_v25 = vpop.permute.xlu2 %536 }
  0xef   : > { %vm664_vm13 = vmor %vm2849_vm12, %vm652_vm10  ;;  %vm724_vm10 = vcmp.eq.s32.totalorder %v1850_v53, %v2454_v58  ;;  %vm756_vm12 = vcmp.eq.s32.totalorder %v1850_v53, %v2412_v50 }
  0xf0   : > { %vm2510_vm2 = vmor %vm660_vm15, %vm684_vm0  ;;  %vm2854_vm0 = vnez %v2835_v59 }
  0xf1   : > { %vm2516_vm14 = vmor %vm664_vm13, %vm688_vm3  ;;  %v1346_v6 = vsel %vm2854_vm0, 1.0, %v1722_v5  ;;  %vm2855_vm3 = vnez %v2839_v62  ;;  %vm760_vm13 = vcmp.eq.s32.totalorder %v1850_v53, %v750_v2 }
  0xf2   : > { %vm770_vm11 = vmor %vm2464_vm1, %vm758_vm9  ;;  %vm649_vm9 = vcmp.eq.s32.totalorder %v1855_v56, %v2283_v26 }
  0xf3   : > { %v1350_v7 = vsel %vm770_vm11, 1.0, %v1722_v5  ;;  %vm771_vm15 = vmor %vm2855_vm3, %vm759_vm8  ;;  %vm653_vm11 = vcmp.eq.s32.totalorder %v1855_v56, %v2231_v17  ;;  %v321_v15 = vpop.permute.xlu1 %320  ;;  %v285_v17 = vpop.permute.xlu0 %284 }
  0xf4   : > { %v802_v8 = vpack.c.bf16 %v1350_v7, %v1346_v6  ;;  %v1351_v10 = vsel %vm771_vm15, 1.0, %v1722_v5  ;;  %vm732_vm1 = vmor %vm2510_vm2, %vm720_vm6  ;;  %vm689_vm2 = vcmp.eq.s32.totalorder %v1855_v56, %v2352_v40 }
  0xf5   : > { %v803_v11 = vpack.c.bf16 %v1351_v10, %v1347_v9  ;;  %vm736_vm8 = vmor %vm2516_vm14, %vm724_vm10  ;;  %vm721_vm10 = vcmp.eq.s32.totalorder %v1855_v56, %v2393_v49 }
  0xf6   : > { %1078 = vmatmul.bf16.vlgmr.msra.gmra.mxu0 %v802_v8  ;;  %vm768_vm0 = vmor %vm732_vm1, %vm756_vm12  ;;  %vm725_vm12 = vcmp.eq.s32.totalorder %v1855_v56, %v2454_v58 }
  0xf7   : > { %1096 = vmatmul.bf16.vlgmr.msra.gmra.mxu1 %v803_v11  ;;  %vm772_vm3 = vmor %vm736_vm8, %vm760_vm13  ;;  %v1348_v12 = vsel %vm768_vm0, 1.0, %v1722_v5  ;;  %vm757_vm13 = vcmp.eq.s32.totalorder %v1855_v56, %v2412_v50  ;;  %vm294_vm0 = vcmp.eq.s32.totalorder %v1842_v51, %v285_v17  ;;  %v2600_v27 = vpop.permute.xlu2 %608 }
  0xf8   : > { %v1352_v13 = vsel %vm772_vm3, 1.0, %v1722_v5  ;;  %vm661_vm14 = vmor %vm2502_vm7, %vm649_vm9  ;;  %vm761_vm9 = vcmp.eq.s32.totalorder %v1855_v56, %v750_v2 }
  0xf9   : > { %v804_v14 = vpack.c.bf16 %v1352_v13, %v1348_v12  ;;  %vm665_vm6 = vmor %vm2492_vm5, %vm653_vm11  ;;  %vm270_vm5 = vcmp.eq.s32.totalorder %v1842_v51, %v2506_v1 }
  0xfa   : > { %vm697_vm15 = vmor %vm661_vm14, %vm685_vm4  ;;  %vm271_vm4 = vcmp.eq.s32.totalorder %v1847_v52, %v2506_v1  ;;  %vm272_vm14 = vcmp.eq.s32.totalorder %v1850_v53, %v2506_v1 }
  0xfb   : > { %1114 = vmatmul.bf16.vlgmr.msra.gmra.mxu2 %v804_v14  ;;  %vm701_vm1 = vmor %vm665_vm6, %vm689_vm2  ;;  %vm295_vm2 = vcmp.eq.s32.totalorder %v1847_v52, %v285_v17  ;;  %vm296_vm6 = vcmp.eq.s32.totalorder %v1850_v53, %v285_v17  ;;  %v465_v22 = vpop.permute.xlu0 %464 }
  0xfc   : > { %vm733_vm7 = vmor %vm697_vm15, %vm721_vm10  ;;  %vm273_vm10 = vcmp.eq.s32.totalorder %v1855_v56, %v2506_v1  ;;  %vm297_vm15 = vcmp.eq.s32.totalorder %v1855_v56, %v285_v17  ;;  %v393_v21 = vpop.permute.xlu1 %392 }
  0xfd   : > { %vm737_vm8 = vmor %vm701_vm1, %vm725_vm12 }
  0xfe   : > { %vm769_vm11 = vmor %vm733_vm7, %vm757_vm13  ;;  %vm330_vm13 = vcmp.eq.s32.totalorder %v1842_v51, %v321_v15 }
  0xff   : > { %vm773_vm3 = vmor %vm737_vm8, %vm761_vm9  ;;  %v1349_v18 = vsel %vm769_vm11, 1.0, %v1722_v5  ;;  %vm331_vm9 = vcmp.eq.s32.totalorder %v1847_v52, %v321_v15  ;;  %vm332_vm11 = vcmp.eq.s32.totalorder %v1850_v53, %v321_v15 }
 0x100   : > { %v1353_v19 = vsel %vm773_vm3, 1.0, %v1722_v5  ;;  %vm306_vm12 = vmor %vm270_vm5, %vm294_vm0  ;;  %vm333_vm3 = vcmp.eq.s32.totalorder %v1855_v56, %v321_v15  ;;  %v717_v34 = vpop.permute.xlu2 %716 }
 0x101   : > { %v805_v20 = vpack.c.bf16 %v1353_v19, %v1349_v18  ;;  %vm307_vm1 = vmor %vm271_vm4, %vm295_vm2  ;;  %vm366_vm2 = vcmp.eq.s32.totalorder %v1842_v51, %v357_v16 }
 0x102   : > { %vm308_vm7 = vmor %vm272_vm14, %vm296_vm6  ;;  %vm367_vm6 = vcmp.eq.s32.totalorder %v1847_v52, %v357_v16 }
 0x103   : > { %1132 = vmatmul.bf16.vlgmr.msra.gmra.mxu3 %v805_v20  ;;  %vm309_vm8 = vmor %vm273_vm10, %vm297_vm15  ;;  %vm368_vm10 = vcmp.eq.s32.totalorder %v1850_v53, %v357_v16  ;;  %vm369_vm15 = vcmp.eq.s32.totalorder %v1855_v56, %v357_v16  ;;  %v645_v32 = vpop.permute.xlu0 %644 }
 0x104   : > { %vm342_vm0 = vmor %vm306_vm12, %vm330_vm13 }
 0x105   : > { %vm343_vm5 = vmor %vm307_vm1, %vm331_vm9  ;;  %vm402_vm1 = vcmp.eq.s32.totalorder %v1842_v51, %v393_v21  ;;  %v501_v24 = vpop.permute.xlu1 %500 }
 0x106   : > { %vm344_vm4 = vmor %vm308_vm7, %vm332_vm11  ;;  %vm403_vm7 = vcmp.eq.s32.totalorder %v1847_v52, %v393_v21 }
 0x107   : > { %vm345_vm14 = vmor %vm309_vm8, %vm333_vm3  ;;  %vm404_vm3 = vcmp.eq.s32.totalorder %v1850_v53, %v393_v21  ;;  %vm405_vm8 = vcmp.eq.s32.totalorder %v1855_v56, %v393_v21 }
 0x108   : > { %vm378_vm12 = vmor %vm342_vm0, %vm366_vm2 }
 0x109   : > { %vm379_vm13 = vmor %vm343_vm5, %vm367_vm6  ;;  %vm438_vm5 = vcmp.eq.s32.totalorder %v1842_v51, %v429_v23 }
 0x10a   : > { %vm380_vm9 = vmor %vm344_vm4, %vm368_vm10  ;;  %vm439_vm4 = vcmp.eq.s32.totalorder %v1847_v52, %v429_v23 }
 0x10b   : > { %vm381_vm11 = vmor %vm345_vm14, %vm369_vm15  ;;  %vm440_vm14 = vcmp.eq.s32.totalorder %v1850_v53, %v429_v23  ;;  %vm441_vm15 = vcmp.eq.s32.totalorder %v1855_v56, %v429_v23  ;;  %v1649_v23 = vld [vmem:[%s2712_s4] ss:$0 sm:$0xff] }
 0x10c   : > { %vm414_vm0 = vmor %vm378_vm12, %vm402_vm1 }
 0x10d   : > { %vm415_vm2 = vmor %vm379_vm13, %vm403_vm7  ;;  %vm474_vm7 = vcmp.eq.s32.totalorder %v1842_v51, %v465_v22 }
 0x10e   : > { %vm416_vm6 = vmor %vm380_vm9, %vm404_vm3  ;;  %vm475_vm3 = vcmp.eq.s32.totalorder %v1847_v52, %v465_v22  ;;  %v573_v26 = vpop.permute.xlu1 %572 }
 0x10f   : > { %vm417_vm10 = vmor %vm381_vm11, %vm405_vm8  ;;  %vm476_vm8 = vcmp.eq.s32.totalorder %v1850_v53, %v465_v22  ;;  %vm477_vm11 = vcmp.eq.s32.totalorder %v1855_v56, %v465_v22 }
 0x110   : > { %vm450_vm1 = vmor %vm414_vm0, %vm438_vm5 }
 0x111   : > { %vm451_vm12 = vmor %vm415_vm2, %vm439_vm4  ;;  %vm510_vm2 = vcmp.eq.s32.totalorder %v1842_v51, %v501_v24 }
 0x112   : > { %vm452_vm13 = vmor %vm416_vm6, %vm440_vm14  ;;  %vm511_vm6 = vcmp.eq.s32.totalorder %v1847_v52, %v501_v24 }
 0x113   : > { %vm453_vm9 = vmor %vm417_vm10, %vm441_vm15  ;;  %vm512_vm10 = vcmp.eq.s32.totalorder %v1850_v53, %v501_v24  ;;  %vm513_vm15 = vcmp.eq.s32.totalorder %v1855_v56, %v501_v24 }
 0x114   : > { %vm486_vm0 = vmor %vm450_vm1, %vm474_vm7 }
 0x115   : > { %vm487_vm5 = vmor %vm451_vm12, %vm475_vm3  ;;  %vm546_vm3 = vcmp.eq.s32.totalorder %v1842_v51, %v537_v25 }
 0x116   : > { %vm488_vm4 = vmor %vm452_vm13, %vm476_vm8  ;;  %vm547_vm8 = vcmp.eq.s32.totalorder %v1847_v52, %v537_v25 }
 0x117   : > { %vm489_vm14 = vmor %vm453_vm9, %vm477_vm11  ;;  %vm548_vm9 = vcmp.eq.s32.totalorder %v1850_v53, %v537_v25  ;;  %vm549_vm11 = vcmp.eq.s32.totalorder %v1855_v56, %v537_v25  ;;  %v2611_v29 = vpop.permute.xlu1 %680 }
 0x118   : > { %vm522_vm1 = vmor %vm486_vm0, %vm510_vm2  ;;  %vm582_vm2 = vcmp.eq.s32.totalorder %v1842_v51, %v573_v26 }
 0x119   : > { %vm523_vm7 = vmor %vm487_vm5, %vm511_vm6  ;;  %vm583_vm6 = vcmp.eq.s32.totalorder %v1847_v52, %v573_v26 }
 0x11a   : > { %vm524_vm12 = vmor %vm488_vm4, %vm512_vm10  ;;  %vm584_vm10 = vcmp.eq.s32.totalorder %v1850_v53, %v573_v26 }
 0x11b   : > { %vm525_vm13 = vmor %vm489_vm14, %vm513_vm15 }
 0x11c   : > { %vm558_vm0 = vmor %vm522_vm1, %vm546_vm3  ;;  %vm618_vm1 = vcmp.eq.s32.totalorder %v1842_v51, %v2600_v27  ;;  %vm654_vm3 = vcmp.eq.s32.totalorder %v1842_v51, %v645_v32 }
 0x11d   : > { %vm559_vm5 = vmor %vm523_vm7, %vm547_vm8  ;;  %vm690_vm8 = vcmp.eq.s32.totalorder %v1842_v51, %v2611_v29 }
 0x11e   : > { %vm560_vm4 = vmor %vm524_vm12, %vm548_vm9  ;;  %vm726_vm9 = vcmp.eq.s32.totalorder %v1842_v51, %v717_v34 }
 0x11f   : > { %vm2618_vm14 = vmor %vm525_vm13, %vm549_vm11  ;;  %vm585_vm11 = vcmp.eq.s32.totalorder %v1855_v56, %v573_v26 }
 0x120   : > { %vm594_vm15 = vmor %vm558_vm0, %vm582_vm2  ;;  %v753_v37 = vpop.permute.xlu1 %752 }
 0x121   : > { %vm2625_vm7 = vmor %vm559_vm5, %vm583_vm6  ;;  %vm619_vm5 = vcmp.eq.s32.totalorder %v1847_v52, %v2600_v27  ;;  %vm655_vm6 = vcmp.eq.s32.totalorder %v1847_v52, %v645_v32 }
 0x122   : > { %vm2630_vm12 = vmor %vm560_vm4, %vm584_vm10  ;;  %vm762_vm10 = vcmp.eq.s32.totalorder %v1842_v51, %v753_v37 }
 0x123   : > { %v2861_v36 = vsel %vm2630_vm12, 4294967295, %v2860_v36  ;;  %vm630_vm13 = vmor %vm594_vm15, %vm618_vm1  ;;  %vm691_vm1 = vcmp.eq.s32.totalorder %v1847_v52, %v2611_v29 }
 0x124   : > { %vm666_vm0 = vmor %vm630_vm13, %vm654_vm3 }
 0x125   : > { %vm702_vm2 = vmor %vm666_vm0, %vm690_vm8  ;;  %vm727_vm8 = vcmp.eq.s32.totalorder %v1847_v52, %v717_v34  ;;  %vm656_vm0 = vcmp.eq.s32.totalorder %v1850_v53, %v645_v32 }
 0x126   : > { %vm738_vm4 = vmor %vm702_vm2, %vm726_vm9  ;;  %vm763_vm9 = vcmp.eq.s32.totalorder %v1847_v52, %v753_v37 }
 0x127   : > { %vm2644_vm12 = vmor %vm2618_vm14, %vm585_vm11  ;;  %vm620_vm14 = vcmp.eq.s32.totalorder %v1850_v53, %v2600_v27 }
 0x128   : > { %vm774_vm15 = vmor %vm738_vm4, %vm762_vm10  ;;  %vm692_vm10 = vcmp.eq.s32.totalorder %v1850_v53, %v2611_v29 }
 0x129   : > { %v1354_v39 = vsel %vm774_vm15, 1.0, %v1722_v5  ;;  %vm631_vm3 = vmor %vm2625_vm7, %vm619_vm5  ;;  %vm2864_vm7 = vnez %v2861_v36 }
 0x12a   : > { %v806_v40 = vpack.c.bf16 %v1354_v39, %v1354_v39  ;;  %vm667_vm13 = vmor %vm631_vm3, %vm655_vm6  ;;  %vm728_vm6 = vcmp.eq.s32.totalorder %v1850_v53, %v717_v34  ;;  %vm764_vm3 = vcmp.eq.s32.totalorder %v1850_v53, %v753_v37 }
 0x12b   : > { %vm703_vm11 = vmor %vm667_vm13, %vm691_vm1  ;;  %vm621_vm1 = vcmp.eq.s32.totalorder %v1855_v56, %v2600_v27 }
 0x12c   : > { %1083 = vmatmul.bf16.gmra.mxu0 %v806_v40  ;;  %vm739_vm2 = vmor %vm703_vm11, %vm727_vm8  ;;  %vm657_vm8 = vcmp.eq.s32.totalorder %v1855_v56, %v645_v32 }
 0x12d   : > { %vm775_vm4 = vmor %vm739_vm2, %vm763_vm9  ;;  %vm693_vm2 = vcmp.eq.s32.totalorder %v1855_v56, %v2611_v29 }
 0x12e   : > { %v1355_v51 = vsel %vm775_vm4, 1.0, %v1722_v5  ;;  %vm632_vm5 = vmor %vm2864_vm7, %vm620_vm14  ;;  %vm765_vm7 = vcmp.eq.s32.totalorder %v1855_v56, %v753_v37 }
 0x12f   : > { %v807_v52 = vpack.c.bf16 %v1355_v51, %v1355_v51  ;;  %vm668_vm15 = vmor %vm632_vm5, %vm656_vm0  ;;  %vm729_vm0 = vcmp.eq.s32.totalorder %v1855_v56, %v717_v34  ;;  %v1555_v56 = vld [vmem:[%s2711_s3 + $0x18] sm:$0xff] }
 0x130   : > { %vm704_vm13 = vmor %vm668_vm15, %vm692_vm10  ;;  %1219 = vmatpush.bf16.msrb.mxu0 %v1555_v56  ;;  %1564 = vmatpush.bf16.msrb.mxu1 %v1555_v56 }
 0x131   : > { %1101 = vmatmul.bf16.gmra.mxu1 %v807_v52  ;;  %vm740_vm9 = vmor %vm704_vm13, %vm728_vm6 }
 0x132   : > { %vm776_vm11 = vmor %vm740_vm9, %vm764_vm3 }
 0x133   : > { %v1356_v41 = vsel %vm776_vm11, 1.0, %v1722_v5  ;;  %vm633_vm14 = vmor %vm2644_vm12, %vm621_vm1 }
 0x134   : > { %v808_v53 = vpack.c.bf16 %v1356_v41, %v1356_v41  ;;  %vm669_vm4 = vmor %vm633_vm14, %vm657_vm8  ;;  %1220 = vmatpush.bf16.msrb.mxu0 %v1554_v44  ;;  %1565 = vmatpush.bf16.msrb.mxu1 %v1554_v44 }
 0x135   : > { %vm705_vm10 = vmor %vm669_vm4, %vm693_vm2 }
 0x136   : > { %1119 = vmatmul.bf16.gmra.mxu2 %v808_v53  ;;  %vm741_vm5 = vmor %vm705_vm10, %vm729_vm0 }
 0x137   : > { %vm777_vm15 = vmor %vm741_vm5, %vm765_vm7 }
 0x138   : > { %v1357_v42 = vsel %vm777_vm15, 1.0, %v1722_v5  ;;  %1221 = vmatpush.bf16.msrb.mxu0 %v1553_v47  ;;  %1566 = vmatpush.bf16.msrb.mxu1 %v1553_v47 }
 0x139   : > { %v809_v43 = vpack.c.bf16 %v1357_v42, %v1357_v42 }
 0x13b   : > { %1137 = vmatmul.bf16.gmra.mxu3 %v809_v43 }
 0x13c   : > { %1222 = vmatpush.bf16.msrb.mxu0 %v1552_v48  ;;  %1567 = vmatpush.bf16.msrb.mxu1 %v1552_v48 }
 0x173   : > { %v1079_v49 = vpop.f32.mrf.mxu0 }
 0x174   : > { %v1097_v50 = vpop.f32.mrf.mxu1  ;;  %v1080_v57 = vadd.f32 %v1648_v54, %v1079_v49 }
 0x176   : > { %v1098_v61 = vadd.f32 %v1097_v50, %v1080_v57 }
 0x17b   : > { %v1081_v55 = vpop.f32.mrf.mxu0 }
 0x17c   : > { %v1082_v58 = vadd.f32 %v1648_v54, %v1081_v55  ;;  %v1099_v62 = vpop.f32.mrf.mxu1 }
 0x17e   : > { %v1115_v30 = vpop.f32.mrf.mxu2  ;;  %v1100_v60 = vadd.f32 %v1099_v62, %v1082_v58 }
 0x17f   : > { %v1116_v0 = vadd.f32 %v1115_v30, %v1098_v61 }
 0x186   : > { %v1133_v59 = vpop.f32.mrf.mxu3  ;;  %v1117_v63 = vpop.f32.mrf.mxu2 }
 0x187   : > { %v1118_v1 = vadd.f32 %v1117_v63, %v1100_v60  ;;  %v1134_v2 = vadd.f32 %v1133_v59, %v1116_v0 }
 0x189   : > { %v1142_v5 = vmax.f32 %v1134_v2, 0.0 }
 0x18e   : > { %v1135_v3 = vpop.f32.mrf.mxu3 }
 0x18f   : > { %v1136_v4 = vadd.f32 %v1135_v3, %v1118_v1 }
 0x191   : > { %v1143_v6 = vmax.f32 %v1136_v4, 0.0 }
 0x193   : > { %v1145_v7 = vpack.c.bf16 %v1143_v6, %v1142_v5 }
 0x195   : > { %1223 = vmatmul.bf16.vlgmr.msrb.gmra.mxu0 %v1145_v7 }
 0x1a9   : > { %v1084_v8 = vpop.f32.mrf.mxu0 }
 0x1aa   : > { %v1085_v11 = vadd.f32 %v1648_v54, %v1084_v8 }
 0x1ae   : > { %v1102_v9 = vpop.f32.mrf.mxu1 }
 0x1af   : > { %v1103_v13 = vadd.f32 %v1102_v9, %v1085_v11 }
 0x1b1   : > { %v1086_v10 = vpop.f32.mrf.mxu0 }
 0x1b6   : > { %v1104_v12 = vpop.f32.mrf.mxu1 }
 0x1b9   : > { %v1120_v14 = vpop.f32.mrf.mxu2 }
 0x1ba   : > { %v1121_v15 = vadd.f32 %v1120_v14, %v1103_v13 }
 0x1be   : > { %v1138_v16 = vpop.f32.mrf.mxu3 }
 0x1bf   : > { %v1139_v17 = vadd.f32 %v1138_v16, %v1121_v15 }
 0x1c1   : > { %v1144_v18 = vmax.f32 %v1139_v17, 0.0  ;;  %v1122_v19 = vpop.f32.mrf.mxu2 }
 0x1c3   : > { %v1146_v20 = vpack.c.bf16 %v1144_v18, %v1144_v18 }
 0x1c5   : > { %1228 = vmatmul.bf16.vlgmr.msrb.gmra.mxu1 %v1146_v20 }
 0x1c6   : > { %v1140_v21 = vpop.f32.mrf.mxu3 }
 0x212   : > { %v1224_v24 = vpop.f32.mrf.mxu0 }
 0x213   : > { %v1225_v25 = vadd.f32 %v1649_v23, %v1224_v24 }
 0x215   : > { %1233 = vmax.xlane.f32.xlu2 %v1225_v25 }
 0x21a   : > { %v1226_v22 = vpop.f32.mrf.mxu0 }
 0x21b   : > { %v1227_v26 = vadd.f32 %v1649_v23, %v1226_v22 }
 0x21d   : > { %1235 = vmax.xlane.f32.xlu0 %v1227_v26 }
 0x242   : > { %v1229_v27 = vpop.f32.mrf.mxu1 }
 0x243   : > { %v1230_v28 = vadd.f32 %v1649_v23, %v1229_v27 }
 0x245   : > { %1237 = vmax.xlane.f32.xlu1 %v1230_v28 }
 0x24a   : > { %v1231_v29 = vpop.f32.mrf.mxu1 }
 0x288   : > { %v1234_v31 = vpop.xlane.xlu2 %1233 }
 0x289   : > { %v1239_v32 = vsub.f32 %v1225_v25, %v1234_v31 }
 0x28b   : > { %v1242_v33 = vmul.f32 1.442695, %v1239_v32 }
 0x28d   : > { %1650 = vpow2.f32 %v1242_v33 }
 0x290   : > { %v1236_v34 = vpop.xlane.xlu0 %1235 }
 0x291   : > { %v1240_v35 = vsub.f32 %v1227_v26, %v1236_v34 }
 0x293   : > { %v1651_v36 = vpop.eup %1650  ;;  %v1244_v37 = vmul.f32 1.442695, %v1240_v35 }
 0x294   : > { %1248 = vadd.xlane.f32.xlu2 %v1651_v36 }
 0x295   : > { %1652 = vpow2.f32 %v1244_v37 }
 0x29b   : > { %v1653_v38 = vpop.eup %1652 }
 0x29c   : > { %1250 = vadd.xlane.f32.xlu2 %v1653_v38 }
 0x2b8   : > { %v1238_v39 = vpop.xlane.xlu1 %1237 }
 0x2b9   : > { %v1241_v40 = vsub.f32 %v1230_v28, %v1238_v39 }
 0x2bb   : > { %v1246_v51 = vmul.f32 1.442695, %v1241_v40 }
 0x2bd   : > { %1654 = vpow2.f32 %v1246_v51 }
 0x2c3   : > { %v1655_v52 = vpop.eup %1654 }
 0x2c4   : > { %1252 = vadd.xlane.f32.xlu0 %v1655_v52 }
 0x307   : > { %v1249_v41 = vpop.xlane.xlu2 %1248 }
 0x308   : > { %1656 = vlog2.f32 %v1249_v41 }
 0x30e   : > { %v1657_v53 = vpop.eup %1656 }
 0x30f   : > { %v1255_v42 = vmul.f32 0.6931472, %v1657_v53  ;;  %v1251_v43 = vpop.xlane.xlu2 %1250 }
 0x310   : > { %1658 = vlog2.f32 %v1251_v43 }
 0x311   : > { %v1260_v45 = vadd.f32 %v1255_v42, %v1234_v31 }
 0x313   : > { %v1263_v46 = vsub.f32 %v1225_v25, %v1260_v45 }
 0x315   : > { %1266 = vst [vmem:[%s243_s7] sm:$0xff] %v1263_v46 }
 0x316   : > { %v1659_v56 = vpop.eup %1658 }
 0x317   : > { %v1257_v44 = vmul.f32 0.6931472, %v1659_v56 }
 0x319   : > { %v1261_v47 = vadd.f32 %v1257_v44, %v1236_v34 }
 0x31b   : > { %v1264_v48 = vsub.f32 %v1227_v26, %v1261_v47 }
 0x31d   : > { %1267 = vst [vmem:[%s243_s7 + $0x8] sm:$0xff] %v1264_v48 }
 0x337   : > { %v1253_v49 = vpop.xlane.xlu0 %1252 }
 0x338   : > { %1660 = vlog2.f32 %v1253_v49 }
 0x33e   : > { %v1661_v50 = vpop.eup %1660 }
 0x33f   : > { %v1259_v30 = vmul.f32 0.6931472, %v1661_v50 }
 0x341   : > { %v1262_v54 = vadd.f32 %v1259_v30, %v1238_v39 }
 0x343   : > { %v1265_v55 = vsub.f32 %v1230_v28, %v1262_v54 }
 0x345   : > { %1268 = vst [vmem:[%s243_s7 + $0x10] sm:$0xff] %v1265_v55 }
 0x346 PF: > { %s16_s18 = sadd.s32 1, %s1702_s18  }
 0x347   : > { %p13_p7 = scmp.ge.s32.totalorder %s16_s18, 4  }
 0x349   :  { %15 = sbr.rel (!%p13_p7) target bundleno = 1 (0x1), region = 75 }
 0x34e   :  { %1291 = vsyncpa [#allocation3], 1 }
 0x34f   :  { %1293 = vsyncpa [#allocation3 + $0x1], 1 }

</bundles_post_ra>
